<compile_context>
chip_gen: v7x
topology: tpu7x:2x2x1
jax: 0.10.0
libtpu: 0.0.40
codegen_flags: <defaults>
</compile_context>

<pallas_src>
import functools

import jax
import jax.numpy as jnp
from jax.experimental import pallas as pl
from jax.experimental.pallas import tpu as pltpu

# ---------------- model dims (small, forward-consistent) ----------------
NUM_PC = 64
NUM_INPUT_DELTA = 64
NUM_OUTPUT_DELTA = 128
EMBED_DIM = 32
HIDDEN_DIM = 32
NUM_LAYERS = 2
NUM_PRED = 10
SEQ_LEN = 8


# ---------------- Pallas kernel: gather + 2-layer LSTM + fc + log_softmax ----------------
def _lstm_fc_kernel(pc_ref, dl_ref, emb_ref, wf_ref, wrec_ref, h0_ref, c0_ref,
                    logp_ref, hn_ref, cn_ref):
    S = pc_ref.shape[0]
    E = emb_ref.shape[1]
    H = h0_ref.shape[1]

    # ---- static slices of the packed parameter arrays; loads hoisted once ----
    r = 2 * E
    wih0_pc = wf_ref[0:E, :]               # (E, 4H)  layer-0 input proj, pc half
    wih0_dl = wf_ref[E:r, :]               # (E, 4H)  layer-0 input proj, delta half
    fcw     = wf_ref[r:r + H, :]           # (H, D)
    b0      = wf_ref[r + H:r + H + 1, :]   # (1, 4H) fused layer-0 bias
    b1      = wf_ref[r + H + 1:r + H + 2, :]
    fcb     = wf_ref[r + H + 2:r + H + 3, :]
    whh0    = wrec_ref[0:H, :]             # (H, 4H)  recurrent weight (bf16 fast path)
    w1      = wrec_ref[H:3 * H, :]         # (2H, 4H) fused [W_ih_l1^T ; W_hh_l1^T]
    rdtype  = whh0.dtype

    # ---- in-kernel embedding gather (indices in SMEM, delta already table-offset) ----
    pc_rows, dl_rows = [], []
    for t in range(S):
        pc_rows.append(emb_ref[pl.ds(pc_ref[t], 1), :])
        dl_rows.append(emb_ref[pl.ds(dl_ref[t], 1), :])
    pc_emb = jnp.concatenate(pc_rows, axis=0)      # (S, E)
    dl_emb = jnp.concatenate(dl_rows, axis=0)      # (S, E)

    # ---- layer-0 input projection hoisted out of the recurrence (SSA, one f32 vreg) ----
    g0 = (jnp.dot(pc_emb, wih0_pc, preferred_element_type=jnp.float32)
          + jnp.dot(dl_emb, wih0_dl, preferred_element_type=jnp.float32)
          + b0)                                    # (S, 4H)

    def gates_to_hc(gates, c_prev):
        # one EUP sigmoid push over [gates ; 2*gates]; tanh(x) = 2*sigmoid(2x) - 1
        stacked = jnp.concatenate([gates, 2.0 * gates], axis=0)   # (2, 4H)
        sig = jax.nn.sigmoid(stacked)
        i = sig[0:1, 0 * H:1 * H]
        f = sig[0:1, 1 * H:2 * H]
        o = sig[0:1, 3 * H:4 * H]
        g = 2.0 * sig[1:2, 2 * H:3 * H] - 1.0
        c_new = f * c_prev + i * g
        h_new = o * jnp.tanh(c_new)
        return h_new, c_new

    # ---- recurrence: h/c live in vregs, loop fully unrolled (static t for SSA slicing) ----
    h0c, c0c = h0_ref[0:1, :], c0_ref[0:1, :]
    h1c, c1c = h0_ref[1:2, :], c0_ref[1:2, :]
    h1_steps = []
    for t in range(S):
        # layer 0: only the recurrent matmul on the critical path
        gates0 = g0[t:t + 1, :] + jnp.dot(h0c.astype(rdtype), whh0,
                                          preferred_element_type=jnp.float32)
        h0c, c0c = gates_to_hc(gates0, c0c)
        # layer 1: single fused matmul over [h0_new, h1_prev]
        h01 = jnp.concatenate([h0c, h1c], axis=-1).astype(rdtype)   # (1, 2H)
        gates1 = jnp.dot(h01, w1, preferred_element_type=jnp.float32) + b1
        h1c, c1c = gates_to_hc(gates1, c1c)
        h1_steps.append(h1c)

    hn_ref[...] = jnp.concatenate([h0c, h1c], axis=0)
    cn_ref[...] = jnp.concatenate([c0c, c1c], axis=0)

    # ---- batched fc + log_softmax over all timesteps; one lane-dense (S, D) store ----
    # (dropout is identity for p=0)
    h1_all = jnp.concatenate(h1_steps, axis=0)                      # (S, H)
    logits = jnp.dot(h1_all, fcw, preferred_element_type=jnp.float32) + fcb
    m = jnp.max(logits, axis=-1, keepdims=True)
    z = logits - m
    lse = jnp.log(jnp.sum(jnp.exp(z), axis=-1, keepdims=True))
    logp_ref[...] = z - lse


def _run_lstm_fc(pc_idx, delta_idx, emb, wf32, wrec, h0, c0):
    S = pc_idx.shape[0]
    L, H = h0.shape
    D = wf32.shape[1]          # packing guarantees D == 4H
    smem = pl.BlockSpec(memory_space=pltpu.MemorySpace.SMEM)
    vmem = pl.BlockSpec(memory_space=pltpu.MemorySpace.VMEM)
    # No grid / tiling: whole problem (~150 KB) lives in VMEM on every TPU generation.
    # TODO(synk): for multi-sequence workloads add a batched B dimension (gates (B,4H)) and a
    #             leading "parallel" grid axis so v7x's second TensorCore takes half the batch.
    return pl.pallas_call(
        _lstm_fc_kernel,
        out_shape=(
            jax.ShapeDtypeStruct((S, D), jnp.float32),   # log-probs
            jax.ShapeDtypeStruct((L, H), jnp.float32),   # h_n
            jax.ShapeDtypeStruct((L, H), jnp.float32),   # c_n
        ),
        in_specs=[smem, smem, vmem, vmem, vmem, vmem, vmem],
        out_specs=(vmem, vmem, vmem),
    )(pc_idx, delta_idx, emb, wf32, wrec, h0, c0)


# ---------------- parameter construction (deterministic) ----------------
def init_params(key):
    ks = jax.random.split(key, 12)
    s = 1.0 / jnp.sqrt(HIDDEN_DIM)
    u = lambda k, shape: jax.random.uniform(k, shape, jnp.float32, -s, s)
    params = dict(
        pc_embed=jax.random.normal(ks[0], (NUM_PC, EMBED_DIM), jnp.float32),
        delta_embed=jax.random.normal(ks[1], (NUM_INPUT_DELTA, EMBED_DIM), jnp.float32),
        # PyTorch-layout LSTM params, layer 0: input_size = 2*EMBED_DIM
        w_ih_l0=u(ks[2], (4 * HIDDEN_DIM, 2 * EMBED_DIM)),
        w_hh_l0=u(ks[3], (4 * HIDDEN_DIM, HIDDEN_DIM)),
        b_ih_l0=u(ks[4], (4 * HIDDEN_DIM,)),
        b_hh_l0=u(ks[5], (4 * HIDDEN_DIM,)),
        # layer 1: input_size = HIDDEN_DIM
        w_ih_l1=u(ks[6], (4 * HIDDEN_DIM, HIDDEN_DIM)),
        w_hh_l1=u(ks[7], (4 * HIDDEN_DIM, HIDDEN_DIM)),
        b_ih_l1=u(ks[8], (4 * HIDDEN_DIM,)),
        b_hh_l1=u(ks[9], (4 * HIDDEN_DIM,)),
        fc_w=u(ks[10], (NUM_OUTPUT_DELTA, HIDDEN_DIM)),
        fc_b=u(ks[11], (NUM_OUTPUT_DELTA,)),
    )
    return params


def prepare_kernel_params(params, recurrent_dtype=jnp.bfloat16):
    """One-time weight repack (transpose, bias fuse, lane-dense packing), outside the jit."""
    E, H, D = EMBED_DIM, HIDDEN_DIM, NUM_OUTPUT_DELTA
    assert 4 * H == D, "weight packing assumes 4*hidden_dim == num_output_delta (both 128 lanes)"

    wih0 = params["w_ih_l0"].T                                   # (2E, 4H)
    fcw = params["fc_w"].T                                       # (H, D)
    b0 = (params["b_ih_l0"] + params["b_hh_l0"]).reshape(1, -1)  # (1, 4H)
    b1 = (params["b_ih_l1"] + params["b_hh_l1"]).reshape(1, -1)  # (1, 4H)
    fcb = params["fc_b"].reshape(1, -1)                          # (1, D)

    # f32 pack (rows): [0:E) wih0_pc | [E:2E) wih0_delta | [2E:2E+H) fcw | b0 | b1 | fcb | pad
    rows = 2 * E + H + 3
    pad = (-rows) % 8
    wf32 = jnp.concatenate(
        [wih0, fcw, b0, b1, fcb, jnp.zeros((pad, 4 * H), jnp.float32)], axis=0)

    # in-loop recurrent weights: whh0 + fused layer-1 weight [wih1^T ; whh1^T]  -> (3H, 4H)
    wrec = jnp.concatenate(
        [params["w_hh_l0"].T, params["w_ih_l1"].T, params["w_hh_l1"].T],
        axis=0).astype(recurrent_dtype)

    # packed embedding table: pc rows first, delta rows after (indices offset by NUM_PC in glue)
    emb = jnp.concatenate([params["pc_embed"], params["delta_embed"]], axis=0)
    return dict(emb=emb, wf32=wf32, wrec=wrec)


# ---------------- full forward (matches EmbeddingLSTM.forward, target=None) ----------------
@functools.partial(jax.jit, static_argnames=("num_pred",))
def embedding_lstm_forward(kparams, pc, delta, h0, c0, num_pred=NUM_PRED):
    pc_idx = pc.astype(jnp.int32)
    delta_idx = delta.astype(jnp.int32) + NUM_PC   # delta table sits after pc table in packed emb
    h0_2d = h0.reshape(NUM_LAYERS, HIDDEN_DIM)
    c0_2d = c0.reshape(NUM_LAYERS, HIDDEN_DIM)

    logp, hn, cn = _run_lstm_fc(pc_idx, delta_idx, kparams["emb"],
                                kparams["wf32"], kparams["wrec"], h0_2d, c0_2d)

    # topk(sorted=False): same index set; jax.lax.top_k returns it sorted (glue)
    _, preds = jax.lax.top_k(logp, num_pred)                     # (S, num_pred)
    # TODO(synk): nll_loss branch (target is not None) not implemented; forward uses target=None.
    state = (hn.reshape(NUM_LAYERS, 1, HIDDEN_DIM),
             cn.reshape(NUM_LAYERS, 1, HIDDEN_DIM))
    return logp, preds, state


# ---------------- pure-JAX reference for correctness ----------------
def reference_forward(params, pc, delta, h0, c0):
    pc_emb = params["pc_embed"][pc]
    delta_emb = params["delta_embed"][delta]
    x = jnp.concatenate([pc_emb, delta_emb], axis=-1)
    H = HIDDEN_DIM
    h = [h0[l, 0] for l in range(NUM_LAYERS)]
    c = [c0[l, 0] for l in range(NUM_LAYERS)]
    wih = [params["w_ih_l0"], params["w_ih_l1"]]
    whh = [params["w_hh_l0"], params["w_hh_l1"]]
    bih = [params["b_ih_l0"], params["b_ih_l1"]]
    bhh = [params["b_hh_l0"], params["b_hh_l1"]]
    logps = []
    for t in range(x.shape[0]):
        inp = x[t]
        for l in range(NUM_LAYERS):
            g = wih[l] @ inp + bih[l] + whh[l] @ h[l] + bhh[l]
            i = jax.nn.sigmoid(g[0 * H:1 * H])
            f = jax.nn.sigmoid(g[1 * H:2 * H])
            gg = jnp.tanh(g[2 * H:3 * H])
            o = jax.nn.sigmoid(g[3 * H:4 * H])
            c[l] = f * c[l] + i * gg
            h[l] = o * jnp.tanh(c[l])
            inp = h[l]
        logits = params["fc_w"] @ h[-1] + params["fc_b"]
        logps.append(jax.nn.log_softmax(logits))
    logp = jnp.stack(logps)
    hn = jnp.stack(h).reshape(NUM_LAYERS, 1, HIDDEN_DIM)
    cn = jnp.stack(c).reshape(NUM_LAYERS, 1, HIDDEN_DIM)
    return logp, hn, cn


if __name__ == "__main__":
    key = jax.random.PRNGKey(0)
    kp, kpc, kdl, kh, kc = jax.random.split(key, 5)

    params = init_params(kp)

    pc = jax.random.randint(kpc, (SEQ_LEN,), 0, NUM_PC, dtype=jnp.int32)
    delta = jax.random.randint(kdl, (SEQ_LEN,), 0, NUM_INPUT_DELTA, dtype=jnp.int32)
    h0 = jax.random.normal(kh, (NUM_LAYERS, 1, HIDDEN_DIM), jnp.float32)
    c0 = jax.random.normal(kc, (NUM_LAYERS, 1, HIDDEN_DIM), jnp.float32)

    logp_ref, hn_ref, cn_ref = reference_forward(params, pc, delta, h0, c0)

    # f32 build: validates the kernel math (gather, gate order, bias fuse, log_softmax) tightly.
    kparams_f32 = prepare_kernel_params(params, recurrent_dtype=jnp.float32)
    logp32, preds32, (hn32, cn32) = embedding_lstm_forward(kparams_f32, pc, delta, h0, c0)
    jax.block_until_ready((logp32, preds32, hn32, cn32))
    assert jnp.allclose(logp32, logp_ref, atol=1e-4, rtol=1e-4)
    assert jnp.allclose(hn32, hn_ref, atol=1e-4, rtol=1e-4)
    assert jnp.allclose(cn32, cn_ref, atol=1e-4, rtol=1e-4)

    # bf16-recurrent-weights build: the fast path (single-pass MXU in the recurrence).
    kparams_bf16 = prepare_kernel_params(params, recurrent_dtype=jnp.bfloat16)
    logp16, preds16, (hn16, cn16) = embedding_lstm_forward(kparams_bf16, pc, delta, h0, c0)
    jax.block_until_ready((logp16, preds16, hn16, cn16))
    assert jnp.allclose(logp16, logp_ref, atol=5e-2, rtol=5e-2)
    assert jnp.allclose(hn16, hn_ref, atol=5e-2, rtol=5e-2)
    assert jnp.allclose(cn16, cn_ref, atol=5e-2, rtol=5e-2)

    assert preds32.shape == (SEQ_LEN, NUM_PRED) and preds16.shape == (SEQ_LEN, NUM_PRED)

    print("KERNEL_OK")
</pallas_src>

<mosaic_0001>
module attributes {stable_mosaic.version = 11 : i64} {
  func.func @_lstm_fc_kernel(%arg0: memref<8xi32, #tpu.memory_space<smem>>, %arg1: memref<8xi32, #tpu.memory_space<smem>>, %arg2: memref<128x32xf32, #tpu.memory_space<vmem>>, %arg3: memref<104x128xf32, #tpu.memory_space<vmem>>, %arg4: memref<96x128xf32, #tpu.memory_space<vmem>>, %arg5: memref<2x32xf32, #tpu.memory_space<vmem>>, %arg6: memref<2x32xf32, #tpu.memory_space<vmem>>, %arg7: memref<8x128xf32, #tpu.memory_space<vmem>>, %arg8: memref<2x32xf32, #tpu.memory_space<vmem>>, %arg9: memref<2x32xf32, #tpu.memory_space<vmem>>) attributes {dimension_semantics = [], scalar_prefetch = 0 : i64, scratch_operands = 0 : i64, tpu.core_type = #tpu.core_type<tc>} {
    %c0 = arith.constant 0 : index
    %c0_0 = arith.constant 0 : index
    %0 = vector.load %arg3[%c0, %c0_0] : memref<104x128xf32, #tpu.memory_space<vmem>>, vector<32x128xf32>
    %c32 = arith.constant 32 : index
    %c0_1 = arith.constant 0 : index
    %1 = vector.load %arg3[%c32, %c0_1] : memref<104x128xf32, #tpu.memory_space<vmem>>, vector<32x128xf32>
    %c64 = arith.constant 64 : index
    %c0_2 = arith.constant 0 : index
    %2 = vector.load %arg3[%c64, %c0_2] : memref<104x128xf32, #tpu.memory_space<vmem>>, vector<32x128xf32>
    %c96 = arith.constant 96 : index
    %c0_3 = arith.constant 0 : index
    %3 = vector.load %arg3[%c96, %c0_3] : memref<104x128xf32, #tpu.memory_space<vmem>>, vector<1x128xf32>
    %c97 = arith.constant 97 : index
    %c0_4 = arith.constant 0 : index
    %4 = vector.load %arg3[%c97, %c0_4] : memref<104x128xf32, #tpu.memory_space<vmem>>, vector<1x128xf32>
    %c98 = arith.constant 98 : index
    %c0_5 = arith.constant 0 : index
    %5 = vector.load %arg3[%c98, %c0_5] : memref<104x128xf32, #tpu.memory_space<vmem>>, vector<1x128xf32>
    %c0_6 = arith.constant 0 : index
    %c0_7 = arith.constant 0 : index
    %6 = vector.load %arg4[%c0_6, %c0_7] : memref<96x128xf32, #tpu.memory_space<vmem>>, vector<32x128xf32>
    %c32_8 = arith.constant 32 : index
    %c0_9 = arith.constant 0 : index
    %7 = vector.load %arg4[%c32_8, %c0_9] : memref<96x128xf32, #tpu.memory_space<vmem>>, vector<64x128xf32>
    %c0_10 = arith.constant 0 : index
    %8 = memref.load %arg0[%c0_10] : memref<8xi32, #tpu.memory_space<smem>>
    %9 = arith.index_cast %8 : i32 to index
    %c0_11 = arith.constant 0 : index
    %10 = vector.load %arg2[%9, %c0_11] : memref<128x32xf32, #tpu.memory_space<vmem>>, vector<1x32xf32>
    %c0_12 = arith.constant 0 : index
    %11 = memref.load %arg1[%c0_12] : memref<8xi32, #tpu.memory_space<smem>>
    %12 = arith.index_cast %11 : i32 to index
    %c0_13 = arith.constant 0 : index
    %13 = vector.load %arg2[%12, %c0_13] : memref<128x32xf32, #tpu.memory_space<vmem>>, vector<1x32xf32>
    %c1 = arith.constant 1 : index
    %14 = memref.load %arg0[%c1] : memref<8xi32, #tpu.memory_space<smem>>
    %15 = arith.index_cast %14 : i32 to index
    %c0_14 = arith.constant 0 : index
    %16 = vector.load %arg2[%15, %c0_14] : memref<128x32xf32, #tpu.memory_space<vmem>>, vector<1x32xf32>
    %c1_15 = arith.constant 1 : index
    %17 = memref.load %arg1[%c1_15] : memref<8xi32, #tpu.memory_space<smem>>
    %18 = arith.index_cast %17 : i32 to index
    %c0_16 = arith.constant 0 : index
    %19 = vector.load %arg2[%18, %c0_16] : memref<128x32xf32, #tpu.memory_space<vmem>>, vector<1x32xf32>
    %c2 = arith.constant 2 : index
    %20 = memref.load %arg0[%c2] : memref<8xi32, #tpu.memory_space<smem>>
    %21 = arith.index_cast %20 : i32 to index
    %c0_17 = arith.constant 0 : index
    %22 = vector.load %arg2[%21, %c0_17] : memref<128x32xf32, #tpu.memory_space<vmem>>, vector<1x32xf32>
    %c2_18 = arith.constant 2 : index
    %23 = memref.load %arg1[%c2_18] : memref<8xi32, #tpu.memory_space<smem>>
    %24 = arith.index_cast %23 : i32 to index
    %c0_19 = arith.constant 0 : index
    %25 = vector.load %arg2[%24, %c0_19] : memref<128x32xf32, #tpu.memory_space<vmem>>, vector<1x32xf32>
    %c3 = arith.constant 3 : index
    %26 = memref.load %arg0[%c3] : memref<8xi32, #tpu.memory_space<smem>>
    %27 = arith.index_cast %26 : i32 to index
    %c0_20 = arith.constant 0 : index
    %28 = vector.load %arg2[%27, %c0_20] : memref<128x32xf32, #tpu.memory_space<vmem>>, vector<1x32xf32>
    %c3_21 = arith.constant 3 : index
    %29 = memref.load %arg1[%c3_21] : memref<8xi32, #tpu.memory_space<smem>>
    %30 = arith.index_cast %29 : i32 to index
    %c0_22 = arith.constant 0 : index
    %31 = vector.load %arg2[%30, %c0_22] : memref<128x32xf32, #tpu.memory_space<vmem>>, vector<1x32xf32>
    %c4 = arith.constant 4 : index
    %32 = memref.load %arg0[%c4] : memref<8xi32, #tpu.memory_space<smem>>
    %33 = arith.index_cast %32 : i32 to index
    %c0_23 = arith.constant 0 : index
    %34 = vector.load %arg2[%33, %c0_23] : memref<128x32xf32, #tpu.memory_space<vmem>>, vector<1x32xf32>
    %c4_24 = arith.constant 4 : index
    %35 = memref.load %arg1[%c4_24] : memref<8xi32, #tpu.memory_space<smem>>
    %36 = arith.index_cast %35 : i32 to index
    %c0_25 = arith.constant 0 : index
    %37 = vector.load %arg2[%36, %c0_25] : memref<128x32xf32, #tpu.memory_space<vmem>>, vector<1x32xf32>
    %c5 = arith.constant 5 : index
    %38 = memref.load %arg0[%c5] : memref<8xi32, #tpu.memory_space<smem>>
    %39 = arith.index_cast %38 : i32 to index
    %c0_26 = arith.constant 0 : index
    %40 = vector.load %arg2[%39, %c0_26] : memref<128x32xf32, #tpu.memory_space<vmem>>, vector<1x32xf32>
    %c5_27 = arith.constant 5 : index
    %41 = memref.load %arg1[%c5_27] : memref<8xi32, #tpu.memory_space<smem>>
    %42 = arith.index_cast %41 : i32 to index
    %c0_28 = arith.constant 0 : index
    %43 = vector.load %arg2[%42, %c0_28] : memref<128x32xf32, #tpu.memory_space<vmem>>, vector<1x32xf32>
    %c6 = arith.constant 6 : index
    %44 = memref.load %arg0[%c6] : memref<8xi32, #tpu.memory_space<smem>>
    %45 = arith.index_cast %44 : i32 to index
    %c0_29 = arith.constant 0 : index
    %46 = vector.load %arg2[%45, %c0_29] : memref<128x32xf32, #tpu.memory_space<vmem>>, vector<1x32xf32>
    %c6_30 = arith.constant 6 : index
    %47 = memref.load %arg1[%c6_30] : memref<8xi32, #tpu.memory_space<smem>>
    %48 = arith.index_cast %47 : i32 to index
    %c0_31 = arith.constant 0 : index
    %49 = vector.load %arg2[%48, %c0_31] : memref<128x32xf32, #tpu.memory_space<vmem>>, vector<1x32xf32>
    %c7 = arith.constant 7 : index
    %50 = memref.load %arg0[%c7] : memref<8xi32, #tpu.memory_space<smem>>
    %51 = arith.index_cast %50 : i32 to index
    %c0_32 = arith.constant 0 : index
    %52 = vector.load %arg2[%51, %c0_32] : memref<128x32xf32, #tpu.memory_space<vmem>>, vector<1x32xf32>
    %c7_33 = arith.constant 7 : index
    %53 = memref.load %arg1[%c7_33] : memref<8xi32, #tpu.memory_space<smem>>
    %54 = arith.index_cast %53 : i32 to index
    %c0_34 = arith.constant 0 : index
    %55 = vector.load %arg2[%54, %c0_34] : memref<128x32xf32, #tpu.memory_space<vmem>>, vector<1x32xf32>
    %56 = tpu.concatenate %10, %16, %22, %28, %34, %40, %46, %52 in 0 : vector<1x32xf32>, vector<1x32xf32>, vector<1x32xf32>, vector<1x32xf32>, vector<1x32xf32>, vector<1x32xf32>, vector<1x32xf32>, vector<1x32xf32> -> vector<8x32xf32>
    %57 = tpu.concatenate %13, %19, %25, %31, %37, %43, %49, %55 in 0 : vector<1x32xf32>, vector<1x32xf32>, vector<1x32xf32>, vector<1x32xf32>, vector<1x32xf32>, vector<1x32xf32>, vector<1x32xf32>, vector<1x32xf32> -> vector<8x32xf32>
    %cst = arith.constant dense<0.000000e+00> : vector<8x128xf32>
    %58 = tpu.matmul %56, %0, %cst {dimension_numbers = #tpu.dot_dimension_numbers<[1], [0], [0], [1], [0, 0, 1, 1], [], []>} : vector<8x32xf32>, vector<32x128xf32>, vector<8x128xf32> -> vector<8x128xf32>
    %cst_35 = arith.constant dense<0.000000e+00> : vector<8x128xf32>
    %59 = tpu.matmul %57, %1, %cst_35 {dimension_numbers = #tpu.dot_dimension_numbers<[1], [0], [0], [1], [0, 0, 1, 1], [], []>} : vector<8x32xf32>, vector<32x128xf32>, vector<8x128xf32> -> vector<8x128xf32>
    %60 = arith.addf %58, %59 : vector<8x128xf32>
    %61 = vector.broadcast %3 : vector<1x128xf32> to vector<8x128xf32>
    %62 = arith.addf %60, %61 : vector<8x128xf32>
    %c0_36 = arith.constant 0 : index
    %c0_37 = arith.constant 0 : index
    %63 = vector.load %arg5[%c0_36, %c0_37] : memref<2x32xf32, #tpu.memory_space<vmem>>, vector<1x32xf32>
    %c0_38 = arith.constant 0 : index
    %c0_39 = arith.constant 0 : index
    %64 = vector.load %arg6[%c0_38, %c0_39] : memref<2x32xf32, #tpu.memory_space<vmem>>, vector<1x32xf32>
    %c1_40 = arith.constant 1 : index
    %c0_41 = arith.constant 0 : index
    %65 = vector.load %arg5[%c1_40, %c0_41] : memref<2x32xf32, #tpu.memory_space<vmem>>, vector<1x32xf32>
    %c1_42 = arith.constant 1 : index
    %c0_43 = arith.constant 0 : index
    %66 = vector.load %arg6[%c1_42, %c0_43] : memref<2x32xf32, #tpu.memory_space<vmem>>, vector<1x32xf32>
    %67 = vector.extract_strided_slice %62 {offsets = [0, 0], sizes = [1, 128], strides = [1, 1]} : vector<8x128xf32> to vector<1x128xf32>
    %cst_44 = arith.constant dense<0.000000e+00> : vector<1x128xf32>
    %68 = tpu.matmul %63, %6, %cst_44 {dimension_numbers = #tpu.dot_dimension_numbers<[1], [0], [0], [1], [0, 0, 1, 1], [], []>} : vector<1x32xf32>, vector<32x128xf32>, vector<1x128xf32> -> vector<1x128xf32>
    %69 = arith.addf %67, %68 : vector<1x128xf32>
    %cst_45 = arith.constant 2.000000e+00 : f32
    %70 = vector.broadcast %cst_45 : f32 to vector<1x128xf32>
    %71 = arith.mulf %70, %69 : vector<1x128xf32>
    %72 = tpu.concatenate %69, %71 in 0 : vector<1x128xf32>, vector<1x128xf32> -> vector<2x128xf32>
    %73 = arith.negf %72 : vector<2x128xf32>
    %74 = math.exp %73 : vector<2x128xf32>
    %cst_46 = arith.constant 1.000000e+00 : f32
    %75 = vector.broadcast %cst_46 : f32 to vector<2x128xf32>
    %76 = arith.addf %75, %74 : vector<2x128xf32>
    %77 = arith.divf %75, %76 : vector<2x128xf32>
    %78 = vector.extract_strided_slice %77 {offsets = [0, 0], sizes = [1, 32], strides = [1, 1]} : vector<2x128xf32> to vector<1x32xf32>
    %79 = vector.extract_strided_slice %77 {offsets = [0, 32], sizes = [1, 32], strides = [1, 1]} : vector<2x128xf32> to vector<1x32xf32>
    %80 = vector.extract_strided_slice %77 {offsets = [0, 96], sizes = [1, 32], strides = [1, 1]} : vector<2x128xf32> to vector<1x32xf32>
    %81 = vector.extract_strided_slice %77 {offsets = [1, 64], sizes = [1, 32], strides = [1, 1]} : vector<2x128xf32> to vector<1x32xf32>
    %cst_47 = arith.constant 2.000000e+00 : f32
    %82 = vector.broadcast %cst_47 : f32 to vector<1x32xf32>
    %83 = arith.mulf %82, %81 : vector<1x32xf32>
    %cst_48 = arith.constant 1.000000e+00 : f32
    %84 = vector.broadcast %cst_48 : f32 to vector<1x32xf32>
    %85 = arith.subf %83, %84 : vector<1x32xf32>
    %86 = arith.mulf %79, %64 : vector<1x32xf32>
    %87 = arith.mulf %78, %85 : vector<1x32xf32>
    %88 = arith.addf %86, %87 : vector<1x32xf32>
    %89 = math.tanh %88 : vector<1x32xf32>
    %90 = arith.mulf %80, %89 : vector<1x32xf32>
    %91 = tpu.concatenate %90, %65 in 1 : vector<1x32xf32>, vector<1x32xf32> -> vector<1x64xf32>
    %cst_49 = arith.constant dense<0.000000e+00> : vector<1x128xf32>
    %92 = tpu.matmul %91, %7, %cst_49 {dimension_numbers = #tpu.dot_dimension_numbers<[1], [0], [0], [1], [0, 0, 1, 1], [], []>} : vector<1x64xf32>, vector<64x128xf32>, vector<1x128xf32> -> vector<1x128xf32>
    %93 = arith.addf %92, %4 : vector<1x128xf32>
    %cst_50 = arith.constant 2.000000e+00 : f32
    %94 = vector.broadcast %cst_50 : f32 to vector<1x128xf32>
    %95 = arith.mulf %94, %93 : vector<1x128xf32>
    %96 = tpu.concatenate %93, %95 in 0 : vector<1x128xf32>, vector<1x128xf32> -> vector<2x128xf32>
    %97 = arith.negf %96 : vector<2x128xf32>
    %98 = math.exp %97 : vector<2x128xf32>
    %cst_51 = arith.constant 1.000000e+00 : f32
    %99 = vector.broadcast %cst_51 : f32 to vector<2x128xf32>
    %100 = arith.addf %99, %98 : vector<2x128xf32>
    %101 = arith.divf %99, %100 : vector<2x128xf32>
    %102 = vector.extract_strided_slice %101 {offsets = [0, 0], sizes = [1, 32], strides = [1, 1]} : vector<2x128xf32> to vector<1x32xf32>
    %103 = vector.extract_strided_slice %101 {offsets = [0, 32], sizes = [1, 32], strides = [1, 1]} : vector<2x128xf32> to vector<1x32xf32>
    %104 = vector.extract_strided_slice %101 {offsets = [0, 96], sizes = [1, 32], strides = [1, 1]} : vector<2x128xf32> to vector<1x32xf32>
    %105 = vector.extract_strided_slice %101 {offsets = [1, 64], sizes = [1, 32], strides = [1, 1]} : vector<2x128xf32> to vector<1x32xf32>
    %cst_52 = arith.constant 2.000000e+00 : f32
    %106 = vector.broadcast %cst_52 : f32 to vector<1x32xf32>
    %107 = arith.mulf %106, %105 : vector<1x32xf32>
    %cst_53 = arith.constant 1.000000e+00 : f32
    %108 = vector.broadcast %cst_53 : f32 to vector<1x32xf32>
    %109 = arith.subf %107, %108 : vector<1x32xf32>
    %110 = arith.mulf %103, %66 : vector<1x32xf32>
    %111 = arith.mulf %102, %109 : vector<1x32xf32>
    %112 = arith.addf %110, %111 : vector<1x32xf32>
    %113 = math.tanh %112 : vector<1x32xf32>
    %114 = arith.mulf %104, %113 : vector<1x32xf32>
    %115 = vector.extract_strided_slice %62 {offsets = [1, 0], sizes = [1, 128], strides = [1, 1]} : vector<8x128xf32> to vector<1x128xf32>
    %cst_54 = arith.constant dense<0.000000e+00> : vector<1x128xf32>
    %116 = tpu.matmul %90, %6, %cst_54 {dimension_numbers = #tpu.dot_dimension_numbers<[1], [0], [0], [1], [0, 0, 1, 1], [], []>} : vector<1x32xf32>, vector<32x128xf32>, vector<1x128xf32> -> vector<1x128xf32>
    %117 = arith.addf %115, %116 : vector<1x128xf32>
    %cst_55 = arith.constant 2.000000e+00 : f32
    %118 = vector.broadcast %cst_55 : f32 to vector<1x128xf32>
    %119 = arith.mulf %118, %117 : vector<1x128xf32>
    %120 = tpu.concatenate %117, %119 in 0 : vector<1x128xf32>, vector<1x128xf32> -> vector<2x128xf32>
    %121 = arith.negf %120 : vector<2x128xf32>
    %122 = math.exp %121 : vector<2x128xf32>
    %cst_56 = arith.constant 1.000000e+00 : f32
    %123 = vector.broadcast %cst_56 : f32 to vector<2x128xf32>
    %124 = arith.addf %123, %122 : vector<2x128xf32>
    %125 = arith.divf %123, %124 : vector<2x128xf32>
    %126 = vector.extract_strided_slice %125 {offsets = [0, 0], sizes = [1, 32], strides = [1, 1]} : vector<2x128xf32> to vector<1x32xf32>
    %127 = vector.extract_strided_slice %125 {offsets = [0, 32], sizes = [1, 32], strides = [1, 1]} : vector<2x128xf32> to vector<1x32xf32>
    %128 = vector.extract_strided_slice %125 {offsets = [0, 96], sizes = [1, 32], strides = [1, 1]} : vector<2x128xf32> to vector<1x32xf32>
    %129 = vector.extract_strided_slice %125 {offsets = [1, 64], sizes = [1, 32], strides = [1, 1]} : vector<2x128xf32> to vector<1x32xf32>
    %cst_57 = arith.constant 2.000000e+00 : f32
    %130 = vector.broadcast %cst_57 : f32 to vector<1x32xf32>
    %131 = arith.mulf %130, %129 : vector<1x32xf32>
    %cst_58 = arith.constant 1.000000e+00 : f32
    %132 = vector.broadcast %cst_58 : f32 to vector<1x32xf32>
    %133 = arith.subf %131, %132 : vector<1x32xf32>
    %134 = arith.mulf %127, %88 : vector<1x32xf32>
    %135 = arith.mulf %126, %133 : vector<1x32xf32>
    %136 = arith.addf %134, %135 : vector<1x32xf32>
    %137 = math.tanh %136 : vector<1x32xf32>
    %138 = arith.mulf %128, %137 : vector<1x32xf32>
    %139 = tpu.concatenate %138, %114 in 1 : vector<1x32xf32>, vector<1x32xf32> -> vector<1x64xf32>
    %cst_59 = arith.constant dense<0.000000e+00> : vector<1x128xf32>
    %140 = tpu.matmul %139, %7, %cst_59 {dimension_numbers = #tpu.dot_dimension_numbers<[1], [0], [0], [1], [0, 0, 1, 1], [], []>} : vector<1x64xf32>, vector<64x128xf32>, vector<1x128xf32> -> vector<1x128xf32>
    %141 = arith.addf %140, %4 : vector<1x128xf32>
    %cst_60 = arith.constant 2.000000e+00 : f32
    %142 = vector.broadcast %cst_60 : f32 to vector<1x128xf32>
    %143 = arith.mulf %142, %141 : vector<1x128xf32>
    %144 = tpu.concatenate %141, %143 in 0 : vector<1x128xf32>, vector<1x128xf32> -> vector<2x128xf32>
    %145 = arith.negf %144 : vector<2x128xf32>
    %146 = math.exp %145 : vector<2x128xf32>
    %cst_61 = arith.constant 1.000000e+00 : f32
    %147 = vector.broadcast %cst_61 : f32 to vector<2x128xf32>
    %148 = arith.addf %147, %146 : vector<2x128xf32>
    %149 = arith.divf %147, %148 : vector<2x128xf32>
    %150 = vector.extract_strided_slice %149 {offsets = [0, 0], sizes = [1, 32], strides = [1, 1]} : vector<2x128xf32> to vector<1x32xf32>
    %151 = vector.extract_strided_slice %149 {offsets = [0, 32], sizes = [1, 32], strides = [1, 1]} : vector<2x128xf32> to vector<1x32xf32>
    %152 = vector.extract_strided_slice %149 {offsets = [0, 96], sizes = [1, 32], strides = [1, 1]} : vector<2x128xf32> to vector<1x32xf32>
    %153 = vector.extract_strided_slice %149 {offsets = [1, 64], sizes = [1, 32], strides = [1, 1]} : vector<2x128xf32> to vector<1x32xf32>
    %cst_62 = arith.constant 2.000000e+00 : f32
    %154 = vector.broadcast %cst_62 : f32 to vector<1x32xf32>
    %155 = arith.mulf %154, %153 : vector<1x32xf32>
    %cst_63 = arith.constant 1.000000e+00 : f32
    %156 = vector.broadcast %cst_63 : f32 to vector<1x32xf32>
    %157 = arith.subf %155, %156 : vector<1x32xf32>
    %158 = arith.mulf %151, %112 : vector<1x32xf32>
    %159 = arith.mulf %150, %157 : vector<1x32xf32>
    %160 = arith.addf %158, %159 : vector<1x32xf32>
    %161 = math.tanh %160 : vector<1x32xf32>
    %162 = arith.mulf %152, %161 : vector<1x32xf32>
    %163 = vector.extract_strided_slice %62 {offsets = [2, 0], sizes = [1, 128], strides = [1, 1]} : vector<8x128xf32> to vector<1x128xf32>
    %cst_64 = arith.constant dense<0.000000e+00> : vector<1x128xf32>
    %164 = tpu.matmul %138, %6, %cst_64 {dimension_numbers = #tpu.dot_dimension_numbers<[1], [0], [0], [1], [0, 0, 1, 1], [], []>} : vector<1x32xf32>, vector<32x128xf32>, vector<1x128xf32> -> vector<1x128xf32>
    %165 = arith.addf %163, %164 : vector<1x128xf32>
    %cst_65 = arith.constant 2.000000e+00 : f32
    %166 = vector.broadcast %cst_65 : f32 to vector<1x128xf32>
    %167 = arith.mulf %166, %165 : vector<1x128xf32>
    %168 = tpu.concatenate %165, %167 in 0 : vector<1x128xf32>, vector<1x128xf32> -> vector<2x128xf32>
    %169 = arith.negf %168 : vector<2x128xf32>
    %170 = math.exp %169 : vector<2x128xf32>
    %cst_66 = arith.constant 1.000000e+00 : f32
    %171 = vector.broadcast %cst_66 : f32 to vector<2x128xf32>
    %172 = arith.addf %171, %170 : vector<2x128xf32>
    %173 = arith.divf %171, %172 : vector<2x128xf32>
    %174 = vector.extract_strided_slice %173 {offsets = [0, 0], sizes = [1, 32], strides = [1, 1]} : vector<2x128xf32> to vector<1x32xf32>
    %175 = vector.extract_strided_slice %173 {offsets = [0, 32], sizes = [1, 32], strides = [1, 1]} : vector<2x128xf32> to vector<1x32xf32>
    %176 = vector.extract_strided_slice %173 {offsets = [0, 96], sizes = [1, 32], strides = [1, 1]} : vector<2x128xf32> to vector<1x32xf32>
    %177 = vector.extract_strided_slice %173 {offsets = [1, 64], sizes = [1, 32], strides = [1, 1]} : vector<2x128xf32> to vector<1x32xf32>
    %cst_67 = arith.constant 2.000000e+00 : f32
    %178 = vector.broadcast %cst_67 : f32 to vector<1x32xf32>
    %179 = arith.mulf %178, %177 : vector<1x32xf32>
    %cst_68 = arith.constant 1.000000e+00 : f32
    %180 = vector.broadcast %cst_68 : f32 to vector<1x32xf32>
    %181 = arith.subf %179, %180 : vector<1x32xf32>
    %182 = arith.mulf %175, %136 : vector<1x32xf32>
    %183 = arith.mulf %174, %181 : vector<1x32xf32>
    %184 = arith.addf %182, %183 : vector<1x32xf32>
    %185 = math.tanh %184 : vector<1x32xf32>
    %186 = arith.mulf %176, %185 : vector<1x32xf32>
    %187 = tpu.concatenate %186, %162 in 1 : vector<1x32xf32>, vector<1x32xf32> -> vector<1x64xf32>
    %cst_69 = arith.constant dense<0.000000e+00> : vector<1x128xf32>
    %188 = tpu.matmul %187, %7, %cst_69 {dimension_numbers = #tpu.dot_dimension_numbers<[1], [0], [0], [1], [0, 0, 1, 1], [], []>} : vector<1x64xf32>, vector<64x128xf32>, vector<1x128xf32> -> vector<1x128xf32>
    %189 = arith.addf %188, %4 : vector<1x128xf32>
    %cst_70 = arith.constant 2.000000e+00 : f32
    %190 = vector.broadcast %cst_70 : f32 to vector<1x128xf32>
    %191 = arith.mulf %190, %189 : vector<1x128xf32>
    %192 = tpu.concatenate %189, %191 in 0 : vector<1x128xf32>, vector<1x128xf32> -> vector<2x128xf32>
    %193 = arith.negf %192 : vector<2x128xf32>
    %194 = math.exp %193 : vector<2x128xf32>
    %cst_71 = arith.constant 1.000000e+00 : f32
    %195 = vector.broadcast %cst_71 : f32 to vector<2x128xf32>
    %196 = arith.addf %195, %194 : vector<2x128xf32>
    %197 = arith.divf %195, %196 : vector<2x128xf32>
    %198 = vector.extract_strided_slice %197 {offsets = [0, 0], sizes = [1, 32], strides = [1, 1]} : vector<2x128xf32> to vector<1x32xf32>
    %199 = vector.extract_strided_slice %197 {offsets = [0, 32], sizes = [1, 32], strides = [1, 1]} : vector<2x128xf32> to vector<1x32xf32>
    %200 = vector.extract_strided_slice %197 {offsets = [0, 96], sizes = [1, 32], strides = [1, 1]} : vector<2x128xf32> to vector<1x32xf32>
    %201 = vector.extract_strided_slice %197 {offsets = [1, 64], sizes = [1, 32], strides = [1, 1]} : vector<2x128xf32> to vector<1x32xf32>
    %cst_72 = arith.constant 2.000000e+00 : f32
    %202 = vector.broadcast %cst_72 : f32 to vector<1x32xf32>
    %203 = arith.mulf %202, %201 : vector<1x32xf32>
    %cst_73 = arith.constant 1.000000e+00 : f32
    %204 = vector.broadcast %cst_73 : f32 to vector<1x32xf32>
    %205 = arith.subf %203, %204 : vector<1x32xf32>
    %206 = arith.mulf %199, %160 : vector<1x32xf32>
    %207 = arith.mulf %198, %205 : vector<1x32xf32>
    %208 = arith.addf %206, %207 : vector<1x32xf32>
    %209 = math.tanh %208 : vector<1x32xf32>
    %210 = arith.mulf %200, %209 : vector<1x32xf32>
    %211 = vector.extract_strided_slice %62 {offsets = [3, 0], sizes = [1, 128], strides = [1, 1]} : vector<8x128xf32> to vector<1x128xf32>
    %cst_74 = arith.constant dense<0.000000e+00> : vector<1x128xf32>
    %212 = tpu.matmul %186, %6, %cst_74 {dimension_numbers = #tpu.dot_dimension_numbers<[1], [0], [0], [1], [0, 0, 1, 1], [], []>} : vector<1x32xf32>, vector<32x128xf32>, vector<1x128xf32> -> vector<1x128xf32>
    %213 = arith.addf %211, %212 : vector<1x128xf32>
    %cst_75 = arith.constant 2.000000e+00 : f32
    %214 = vector.broadcast %cst_75 : f32 to vector<1x128xf32>
    %215 = arith.mulf %214, %213 : vector<1x128xf32>
    %216 = tpu.concatenate %213, %215 in 0 : vector<1x128xf32>, vector<1x128xf32> -> vector<2x128xf32>
    %217 = arith.negf %216 : vector<2x128xf32>
    %218 = math.exp %217 : vector<2x128xf32>
    %cst_76 = arith.constant 1.000000e+00 : f32
    %219 = vector.broadcast %cst_76 : f32 to vector<2x128xf32>
    %220 = arith.addf %219, %218 : vector<2x128xf32>
    %221 = arith.divf %219, %220 : vector<2x128xf32>
    %222 = vector.extract_strided_slice %221 {offsets = [0, 0], sizes = [1, 32], strides = [1, 1]} : vector<2x128xf32> to vector<1x32xf32>
    %223 = vector.extract_strided_slice %221 {offsets = [0, 32], sizes = [1, 32], strides = [1, 1]} : vector<2x128xf32> to vector<1x32xf32>
    %224 = vector.extract_strided_slice %221 {offsets = [0, 96], sizes = [1, 32], strides = [1, 1]} : vector<2x128xf32> to vector<1x32xf32>
    %225 = vector.extract_strided_slice %221 {offsets = [1, 64], sizes = [1, 32], strides = [1, 1]} : vector<2x128xf32> to vector<1x32xf32>
    %cst_77 = arith.constant 2.000000e+00 : f32
    %226 = vector.broadcast %cst_77 : f32 to vector<1x32xf32>
    %227 = arith.mulf %226, %225 : vector<1x32xf32>
    %cst_78 = arith.constant 1.000000e+00 : f32
    %228 = vector.broadcast %cst_78 : f32 to vector<1x32xf32>
    %229 = arith.subf %227, %228 : vector<1x32xf32>
    %230 = arith.mulf %223, %184 : vector<1x32xf32>
    %231 = arith.mulf %222, %229 : vector<1x32xf32>
    %232 = arith.addf %230, %231 : vector<1x32xf32>
    %233 = math.tanh %232 : vector<1x32xf32>
    %234 = arith.mulf %224, %233 : vector<1x32xf32>
    %235 = tpu.concatenate %234, %210 in 1 : vector<1x32xf32>, vector<1x32xf32> -> vector<1x64xf32>
    %cst_79 = arith.constant dense<0.000000e+00> : vector<1x128xf32>
    %236 = tpu.matmul %235, %7, %cst_79 {dimension_numbers = #tpu.dot_dimension_numbers<[1], [0], [0], [1], [0, 0, 1, 1], [], []>} : vector<1x64xf32>, vector<64x128xf32>, vector<1x128xf32> -> vector<1x128xf32>
    %237 = arith.addf %236, %4 : vector<1x128xf32>
    %cst_80 = arith.constant 2.000000e+00 : f32
    %238 = vector.broadcast %cst_80 : f32 to vector<1x128xf32>
    %239 = arith.mulf %238, %237 : vector<1x128xf32>
    %240 = tpu.concatenate %237, %239 in 0 : vector<1x128xf32>, vector<1x128xf32> -> vector<2x128xf32>
    %241 = arith.negf %240 : vector<2x128xf32>
    %242 = math.exp %241 : vector<2x128xf32>
    %cst_81 = arith.constant 1.000000e+00 : f32
    %243 = vector.broadcast %cst_81 : f32 to vector<2x128xf32>
    %244 = arith.addf %243, %242 : vector<2x128xf32>
    %245 = arith.divf %243, %244 : vector<2x128xf32>
    %246 = vector.extract_strided_slice %245 {offsets = [0, 0], sizes = [1, 32], strides = [1, 1]} : vector<2x128xf32> to vector<1x32xf32>
    %247 = vector.extract_strided_slice %245 {offsets = [0, 32], sizes = [1, 32], strides = [1, 1]} : vector<2x128xf32> to vector<1x32xf32>
    %248 = vector.extract_strided_slice %245 {offsets = [0, 96], sizes = [1, 32], strides = [1, 1]} : vector<2x128xf32> to vector<1x32xf32>
    %249 = vector.extract_strided_slice %245 {offsets = [1, 64], sizes = [1, 32], strides = [1, 1]} : vector<2x128xf32> to vector<1x32xf32>
    %cst_82 = arith.constant 2.000000e+00 : f32
    %250 = vector.broadcast %cst_82 : f32 to vector<1x32xf32>
    %251 = arith.mulf %250, %249 : vector<1x32xf32>
    %cst_83 = arith.constant 1.000000e+00 : f32
    %252 = vector.broadcast %cst_83 : f32 to vector<1x32xf32>
    %253 = arith.subf %251, %252 : vector<1x32xf32>
    %254 = arith.mulf %247, %208 : vector<1x32xf32>
    %255 = arith.mulf %246, %253 : vector<1x32xf32>
    %256 = arith.addf %254, %255 : vector<1x32xf32>
    %257 = math.tanh %256 : vector<1x32xf32>
    %258 = arith.mulf %248, %257 : vector<1x32xf32>
    %259 = vector.extract_strided_slice %62 {offsets = [4, 0], sizes = [1, 128], strides = [1, 1]} : vector<8x128xf32> to vector<1x128xf32>
    %cst_84 = arith.constant dense<0.000000e+00> : vector<1x128xf32>
    %260 = tpu.matmul %234, %6, %cst_84 {dimension_numbers = #tpu.dot_dimension_numbers<[1], [0], [0], [1], [0, 0, 1, 1], [], []>} : vector<1x32xf32>, vector<32x128xf32>, vector<1x128xf32> -> vector<1x128xf32>
    %261 = arith.addf %259, %260 : vector<1x128xf32>
    %cst_85 = arith.constant 2.000000e+00 : f32
    %262 = vector.broadcast %cst_85 : f32 to vector<1x128xf32>
    %263 = arith.mulf %262, %261 : vector<1x128xf32>
    %264 = tpu.concatenate %261, %263 in 0 : vector<1x128xf32>, vector<1x128xf32> -> vector<2x128xf32>
    %265 = arith.negf %264 : vector<2x128xf32>
    %266 = math.exp %265 : vector<2x128xf32>
    %cst_86 = arith.constant 1.000000e+00 : f32
    %267 = vector.broadcast %cst_86 : f32 to vector<2x128xf32>
    %268 = arith.addf %267, %266 : vector<2x128xf32>
    %269 = arith.divf %267, %268 : vector<2x128xf32>
    %270 = vector.extract_strided_slice %269 {offsets = [0, 0], sizes = [1, 32], strides = [1, 1]} : vector<2x128xf32> to vector<1x32xf32>
    %271 = vector.extract_strided_slice %269 {offsets = [0, 32], sizes = [1, 32], strides = [1, 1]} : vector<2x128xf32> to vector<1x32xf32>
    %272 = vector.extract_strided_slice %269 {offsets = [0, 96], sizes = [1, 32], strides = [1, 1]} : vector<2x128xf32> to vector<1x32xf32>
    %273 = vector.extract_strided_slice %269 {offsets = [1, 64], sizes = [1, 32], strides = [1, 1]} : vector<2x128xf32> to vector<1x32xf32>
    %cst_87 = arith.constant 2.000000e+00 : f32
    %274 = vector.broadcast %cst_87 : f32 to vector<1x32xf32>
    %275 = arith.mulf %274, %273 : vector<1x32xf32>
    %cst_88 = arith.constant 1.000000e+00 : f32
    %276 = vector.broadcast %cst_88 : f32 to vector<1x32xf32>
    %277 = arith.subf %275, %276 : vector<1x32xf32>
    %278 = arith.mulf %271, %232 : vector<1x32xf32>
    %279 = arith.mulf %270, %277 : vector<1x32xf32>
    %280 = arith.addf %278, %279 : vector<1x32xf32>
    %281 = math.tanh %280 : vector<1x32xf32>
    %282 = arith.mulf %272, %281 : vector<1x32xf32>
    %283 = tpu.concatenate %282, %258 in 1 : vector<1x32xf32>, vector<1x32xf32> -> vector<1x64xf32>
    %cst_89 = arith.constant dense<0.000000e+00> : vector<1x128xf32>
    %284 = tpu.matmul %283, %7, %cst_89 {dimension_numbers = #tpu.dot_dimension_numbers<[1], [0], [0], [1], [0, 0, 1, 1], [], []>} : vector<1x64xf32>, vector<64x128xf32>, vector<1x128xf32> -> vector<1x128xf32>
    %285 = arith.addf %284, %4 : vector<1x128xf32>
    %cst_90 = arith.constant 2.000000e+00 : f32
    %286 = vector.broadcast %cst_90 : f32 to vector<1x128xf32>
    %287 = arith.mulf %286, %285 : vector<1x128xf32>
    %288 = tpu.concatenate %285, %287 in 0 : vector<1x128xf32>, vector<1x128xf32> -> vector<2x128xf32>
    %289 = arith.negf %288 : vector<2x128xf32>
    %290 = math.exp %289 : vector<2x128xf32>
    %cst_91 = arith.constant 1.000000e+00 : f32
    %291 = vector.broadcast %cst_91 : f32 to vector<2x128xf32>
    %292 = arith.addf %291, %290 : vector<2x128xf32>
    %293 = arith.divf %291, %292 : vector<2x128xf32>
    %294 = vector.extract_strided_slice %293 {offsets = [0, 0], sizes = [1, 32], strides = [1, 1]} : vector<2x128xf32> to vector<1x32xf32>
    %295 = vector.extract_strided_slice %293 {offsets = [0, 32], sizes = [1, 32], strides = [1, 1]} : vector<2x128xf32> to vector<1x32xf32>
    %296 = vector.extract_strided_slice %293 {offsets = [0, 96], sizes = [1, 32], strides = [1, 1]} : vector<2x128xf32> to vector<1x32xf32>
    %297 = vector.extract_strided_slice %293 {offsets = [1, 64], sizes = [1, 32], strides = [1, 1]} : vector<2x128xf32> to vector<1x32xf32>
    %cst_92 = arith.constant 2.000000e+00 : f32
    %298 = vector.broadcast %cst_92 : f32 to vector<1x32xf32>
    %299 = arith.mulf %298, %297 : vector<1x32xf32>
    %cst_93 = arith.constant 1.000000e+00 : f32
    %300 = vector.broadcast %cst_93 : f32 to vector<1x32xf32>
    %301 = arith.subf %299, %300 : vector<1x32xf32>
    %302 = arith.mulf %295, %256 : vector<1x32xf32>
    %303 = arith.mulf %294, %301 : vector<1x32xf32>
    %304 = arith.addf %302, %303 : vector<1x32xf32>
    %305 = math.tanh %304 : vector<1x32xf32>
    %306 = arith.mulf %296, %305 : vector<1x32xf32>
    %307 = vector.extract_strided_slice %62 {offsets = [5, 0], sizes = [1, 128], strides = [1, 1]} : vector<8x128xf32> to vector<1x128xf32>
    %cst_94 = arith.constant dense<0.000000e+00> : vector<1x128xf32>
    %308 = tpu.matmul %282, %6, %cst_94 {dimension_numbers = #tpu.dot_dimension_numbers<[1], [0], [0], [1], [0, 0, 1, 1], [], []>} : vector<1x32xf32>, vector<32x128xf32>, vector<1x128xf32> -> vector<1x128xf32>
    %309 = arith.addf %307, %308 : vector<1x128xf32>
    %cst_95 = arith.constant 2.000000e+00 : f32
    %310 = vector.broadcast %cst_95 : f32 to vector<1x128xf32>
    %311 = arith.mulf %310, %309 : vector<1x128xf32>
    %312 = tpu.concatenate %309, %311 in 0 : vector<1x128xf32>, vector<1x128xf32> -> vector<2x128xf32>
    %313 = arith.negf %312 : vector<2x128xf32>
    %314 = math.exp %313 : vector<2x128xf32>
    %cst_96 = arith.constant 1.000000e+00 : f32
    %315 = vector.broadcast %cst_96 : f32 to vector<2x128xf32>
    %316 = arith.addf %315, %314 : vector<2x128xf32>
    %317 = arith.divf %315, %316 : vector<2x128xf32>
    %318 = vector.extract_strided_slice %317 {offsets = [0, 0], sizes = [1, 32], strides = [1, 1]} : vector<2x128xf32> to vector<1x32xf32>
    %319 = vector.extract_strided_slice %317 {offsets = [0, 32], sizes = [1, 32], strides = [1, 1]} : vector<2x128xf32> to vector<1x32xf32>
    %320 = vector.extract_strided_slice %317 {offsets = [0, 96], sizes = [1, 32], strides = [1, 1]} : vector<2x128xf32> to vector<1x32xf32>
    %321 = vector.extract_strided_slice %317 {offsets = [1, 64], sizes = [1, 32], strides = [1, 1]} : vector<2x128xf32> to vector<1x32xf32>
    %cst_97 = arith.constant 2.000000e+00 : f32
    %322 = vector.broadcast %cst_97 : f32 to vector<1x32xf32>
    %323 = arith.mulf %322, %321 : vector<1x32xf32>
    %cst_98 = arith.constant 1.000000e+00 : f32
    %324 = vector.broadcast %cst_98 : f32 to vector<1x32xf32>
    %325 = arith.subf %323, %324 : vector<1x32xf32>
    %326 = arith.mulf %319, %280 : vector<1x32xf32>
    %327 = arith.mulf %318, %325 : vector<1x32xf32>
    %328 = arith.addf %326, %327 : vector<1x32xf32>
    %329 = math.tanh %328 : vector<1x32xf32>
    %330 = arith.mulf %320, %329 : vector<1x32xf32>
    %331 = tpu.concatenate %330, %306 in 1 : vector<1x32xf32>, vector<1x32xf32> -> vector<1x64xf32>
    %cst_99 = arith.constant dense<0.000000e+00> : vector<1x128xf32>
    %332 = tpu.matmul %331, %7, %cst_99 {dimension_numbers = #tpu.dot_dimension_numbers<[1], [0], [0], [1], [0, 0, 1, 1], [], []>} : vector<1x64xf32>, vector<64x128xf32>, vector<1x128xf32> -> vector<1x128xf32>
    %333 = arith.addf %332, %4 : vector<1x128xf32>
    %cst_100 = arith.constant 2.000000e+00 : f32
    %334 = vector.broadcast %cst_100 : f32 to vector<1x128xf32>
    %335 = arith.mulf %334, %333 : vector<1x128xf32>
    %336 = tpu.concatenate %333, %335 in 0 : vector<1x128xf32>, vector<1x128xf32> -> vector<2x128xf32>
    %337 = arith.negf %336 : vector<2x128xf32>
    %338 = math.exp %337 : vector<2x128xf32>
    %cst_101 = arith.constant 1.000000e+00 : f32
    %339 = vector.broadcast %cst_101 : f32 to vector<2x128xf32>
    %340 = arith.addf %339, %338 : vector<2x128xf32>
    %341 = arith.divf %339, %340 : vector<2x128xf32>
    %342 = vector.extract_strided_slice %341 {offsets = [0, 0], sizes = [1, 32], strides = [1, 1]} : vector<2x128xf32> to vector<1x32xf32>
    %343 = vector.extract_strided_slice %341 {offsets = [0, 32], sizes = [1, 32], strides = [1, 1]} : vector<2x128xf32> to vector<1x32xf32>
    %344 = vector.extract_strided_slice %341 {offsets = [0, 96], sizes = [1, 32], strides = [1, 1]} : vector<2x128xf32> to vector<1x32xf32>
    %345 = vector.extract_strided_slice %341 {offsets = [1, 64], sizes = [1, 32], strides = [1, 1]} : vector<2x128xf32> to vector<1x32xf32>
    %cst_102 = arith.constant 2.000000e+00 : f32
    %346 = vector.broadcast %cst_102 : f32 to vector<1x32xf32>
    %347 = arith.mulf %346, %345 : vector<1x32xf32>
    %cst_103 = arith.constant 1.000000e+00 : f32
    %348 = vector.broadcast %cst_103 : f32 to vector<1x32xf32>
    %349 = arith.subf %347, %348 : vector<1x32xf32>
    %350 = arith.mulf %343, %304 : vector<1x32xf32>
    %351 = arith.mulf %342, %349 : vector<1x32xf32>
    %352 = arith.addf %350, %351 : vector<1x32xf32>
    %353 = math.tanh %352 : vector<1x32xf32>
    %354 = arith.mulf %344, %353 : vector<1x32xf32>
    %355 = vector.extract_strided_slice %62 {offsets = [6, 0], sizes = [1, 128], strides = [1, 1]} : vector<8x128xf32> to vector<1x128xf32>
    %cst_104 = arith.constant dense<0.000000e+00> : vector<1x128xf32>
    %356 = tpu.matmul %330, %6, %cst_104 {dimension_numbers = #tpu.dot_dimension_numbers<[1], [0], [0], [1], [0, 0, 1, 1], [], []>} : vector<1x32xf32>, vector<32x128xf32>, vector<1x128xf32> -> vector<1x128xf32>
    %357 = arith.addf %355, %356 : vector<1x128xf32>
    %cst_105 = arith.constant 2.000000e+00 : f32
    %358 = vector.broadcast %cst_105 : f32 to vector<1x128xf32>
    %359 = arith.mulf %358, %357 : vector<1x128xf32>
    %360 = tpu.concatenate %357, %359 in 0 : vector<1x128xf32>, vector<1x128xf32> -> vector<2x128xf32>
    %361 = arith.negf %360 : vector<2x128xf32>
    %362 = math.exp %361 : vector<2x128xf32>
    %cst_106 = arith.constant 1.000000e+00 : f32
    %363 = vector.broadcast %cst_106 : f32 to vector<2x128xf32>
    %364 = arith.addf %363, %362 : vector<2x128xf32>
    %365 = arith.divf %363, %364 : vector<2x128xf32>
    %366 = vector.extract_strided_slice %365 {offsets = [0, 0], sizes = [1, 32], strides = [1, 1]} : vector<2x128xf32> to vector<1x32xf32>
    %367 = vector.extract_strided_slice %365 {offsets = [0, 32], sizes = [1, 32], strides = [1, 1]} : vector<2x128xf32> to vector<1x32xf32>
    %368 = vector.extract_strided_slice %365 {offsets = [0, 96], sizes = [1, 32], strides = [1, 1]} : vector<2x128xf32> to vector<1x32xf32>
    %369 = vector.extract_strided_slice %365 {offsets = [1, 64], sizes = [1, 32], strides = [1, 1]} : vector<2x128xf32> to vector<1x32xf32>
    %cst_107 = arith.constant 2.000000e+00 : f32
    %370 = vector.broadcast %cst_107 : f32 to vector<1x32xf32>
    %371 = arith.mulf %370, %369 : vector<1x32xf32>
    %cst_108 = arith.constant 1.000000e+00 : f32
    %372 = vector.broadcast %cst_108 : f32 to vector<1x32xf32>
    %373 = arith.subf %371, %372 : vector<1x32xf32>
    %374 = arith.mulf %367, %328 : vector<1x32xf32>
    %375 = arith.mulf %366, %373 : vector<1x32xf32>
    %376 = arith.addf %374, %375 : vector<1x32xf32>
    %377 = math.tanh %376 : vector<1x32xf32>
    %378 = arith.mulf %368, %377 : vector<1x32xf32>
    %379 = tpu.concatenate %378, %354 in 1 : vector<1x32xf32>, vector<1x32xf32> -> vector<1x64xf32>
    %cst_109 = arith.constant dense<0.000000e+00> : vector<1x128xf32>
    %380 = tpu.matmul %379, %7, %cst_109 {dimension_numbers = #tpu.dot_dimension_numbers<[1], [0], [0], [1], [0, 0, 1, 1], [], []>} : vector<1x64xf32>, vector<64x128xf32>, vector<1x128xf32> -> vector<1x128xf32>
    %381 = arith.addf %380, %4 : vector<1x128xf32>
    %cst_110 = arith.constant 2.000000e+00 : f32
    %382 = vector.broadcast %cst_110 : f32 to vector<1x128xf32>
    %383 = arith.mulf %382, %381 : vector<1x128xf32>
    %384 = tpu.concatenate %381, %383 in 0 : vector<1x128xf32>, vector<1x128xf32> -> vector<2x128xf32>
    %385 = arith.negf %384 : vector<2x128xf32>
    %386 = math.exp %385 : vector<2x128xf32>
    %cst_111 = arith.constant 1.000000e+00 : f32
    %387 = vector.broadcast %cst_111 : f32 to vector<2x128xf32>
    %388 = arith.addf %387, %386 : vector<2x128xf32>
    %389 = arith.divf %387, %388 : vector<2x128xf32>
    %390 = vector.extract_strided_slice %389 {offsets = [0, 0], sizes = [1, 32], strides = [1, 1]} : vector<2x128xf32> to vector<1x32xf32>
    %391 = vector.extract_strided_slice %389 {offsets = [0, 32], sizes = [1, 32], strides = [1, 1]} : vector<2x128xf32> to vector<1x32xf32>
    %392 = vector.extract_strided_slice %389 {offsets = [0, 96], sizes = [1, 32], strides = [1, 1]} : vector<2x128xf32> to vector<1x32xf32>
    %393 = vector.extract_strided_slice %389 {offsets = [1, 64], sizes = [1, 32], strides = [1, 1]} : vector<2x128xf32> to vector<1x32xf32>
    %cst_112 = arith.constant 2.000000e+00 : f32
    %394 = vector.broadcast %cst_112 : f32 to vector<1x32xf32>
    %395 = arith.mulf %394, %393 : vector<1x32xf32>
    %cst_113 = arith.constant 1.000000e+00 : f32
    %396 = vector.broadcast %cst_113 : f32 to vector<1x32xf32>
    %397 = arith.subf %395, %396 : vector<1x32xf32>
    %398 = arith.mulf %391, %352 : vector<1x32xf32>
    %399 = arith.mulf %390, %397 : vector<1x32xf32>
    %400 = arith.addf %398, %399 : vector<1x32xf32>
    %401 = math.tanh %400 : vector<1x32xf32>
    %402 = arith.mulf %392, %401 : vector<1x32xf32>
    %403 = vector.extract_strided_slice %62 {offsets = [7, 0], sizes = [1, 128], strides = [1, 1]} : vector<8x128xf32> to vector<1x128xf32>
    %cst_114 = arith.constant dense<0.000000e+00> : vector<1x128xf32>
    %404 = tpu.matmul %378, %6, %cst_114 {dimension_numbers = #tpu.dot_dimension_numbers<[1], [0], [0], [1], [0, 0, 1, 1], [], []>} : vector<1x32xf32>, vector<32x128xf32>, vector<1x128xf32> -> vector<1x128xf32>
    %405 = arith.addf %403, %404 : vector<1x128xf32>
    %cst_115 = arith.constant 2.000000e+00 : f32
    %406 = vector.broadcast %cst_115 : f32 to vector<1x128xf32>
    %407 = arith.mulf %406, %405 : vector<1x128xf32>
    %408 = tpu.concatenate %405, %407 in 0 : vector<1x128xf32>, vector<1x128xf32> -> vector<2x128xf32>
    %409 = arith.negf %408 : vector<2x128xf32>
    %410 = math.exp %409 : vector<2x128xf32>
    %cst_116 = arith.constant 1.000000e+00 : f32
    %411 = vector.broadcast %cst_116 : f32 to vector<2x128xf32>
    %412 = arith.addf %411, %410 : vector<2x128xf32>
    %413 = arith.divf %411, %412 : vector<2x128xf32>
    %414 = vector.extract_strided_slice %413 {offsets = [0, 0], sizes = [1, 32], strides = [1, 1]} : vector<2x128xf32> to vector<1x32xf32>
    %415 = vector.extract_strided_slice %413 {offsets = [0, 32], sizes = [1, 32], strides = [1, 1]} : vector<2x128xf32> to vector<1x32xf32>
    %416 = vector.extract_strided_slice %413 {offsets = [0, 96], sizes = [1, 32], strides = [1, 1]} : vector<2x128xf32> to vector<1x32xf32>
    %417 = vector.extract_strided_slice %413 {offsets = [1, 64], sizes = [1, 32], strides = [1, 1]} : vector<2x128xf32> to vector<1x32xf32>
    %cst_117 = arith.constant 2.000000e+00 : f32
    %418 = vector.broadcast %cst_117 : f32 to vector<1x32xf32>
    %419 = arith.mulf %418, %417 : vector<1x32xf32>
    %cst_118 = arith.constant 1.000000e+00 : f32
    %420 = vector.broadcast %cst_118 : f32 to vector<1x32xf32>
    %421 = arith.subf %419, %420 : vector<1x32xf32>
    %422 = arith.mulf %415, %376 : vector<1x32xf32>
    %423 = arith.mulf %414, %421 : vector<1x32xf32>
    %424 = arith.addf %422, %423 : vector<1x32xf32>
    %425 = math.tanh %424 : vector<1x32xf32>
    %426 = arith.mulf %416, %425 : vector<1x32xf32>
    %427 = tpu.concatenate %426, %402 in 1 : vector<1x32xf32>, vector<1x32xf32> -> vector<1x64xf32>
    %cst_119 = arith.constant dense<0.000000e+00> : vector<1x128xf32>
    %428 = tpu.matmul %427, %7, %cst_119 {dimension_numbers = #tpu.dot_dimension_numbers<[1], [0], [0], [1], [0, 0, 1, 1], [], []>} : vector<1x64xf32>, vector<64x128xf32>, vector<1x128xf32> -> vector<1x128xf32>
    %429 = arith.addf %428, %4 : vector<1x128xf32>
    %cst_120 = arith.constant 2.000000e+00 : f32
    %430 = vector.broadcast %cst_120 : f32 to vector<1x128xf32>
    %431 = arith.mulf %430, %429 : vector<1x128xf32>
    %432 = tpu.concatenate %429, %431 in 0 : vector<1x128xf32>, vector<1x128xf32> -> vector<2x128xf32>
    %433 = arith.negf %432 : vector<2x128xf32>
    %434 = math.exp %433 : vector<2x128xf32>
    %cst_121 = arith.constant 1.000000e+00 : f32
    %435 = vector.broadcast %cst_121 : f32 to vector<2x128xf32>
    %436 = arith.addf %435, %434 : vector<2x128xf32>
    %437 = arith.divf %435, %436 : vector<2x128xf32>
    %438 = vector.extract_strided_slice %437 {offsets = [0, 0], sizes = [1, 32], strides = [1, 1]} : vector<2x128xf32> to vector<1x32xf32>
    %439 = vector.extract_strided_slice %437 {offsets = [0, 32], sizes = [1, 32], strides = [1, 1]} : vector<2x128xf32> to vector<1x32xf32>
    %440 = vector.extract_strided_slice %437 {offsets = [0, 96], sizes = [1, 32], strides = [1, 1]} : vector<2x128xf32> to vector<1x32xf32>
    %441 = vector.extract_strided_slice %437 {offsets = [1, 64], sizes = [1, 32], strides = [1, 1]} : vector<2x128xf32> to vector<1x32xf32>
    %cst_122 = arith.constant 2.000000e+00 : f32
    %442 = vector.broadcast %cst_122 : f32 to vector<1x32xf32>
    %443 = arith.mulf %442, %441 : vector<1x32xf32>
    %cst_123 = arith.constant 1.000000e+00 : f32
    %444 = vector.broadcast %cst_123 : f32 to vector<1x32xf32>
    %445 = arith.subf %443, %444 : vector<1x32xf32>
    %446 = arith.mulf %439, %400 : vector<1x32xf32>
    %447 = arith.mulf %438, %445 : vector<1x32xf32>
    %448 = arith.addf %446, %447 : vector<1x32xf32>
    %449 = math.tanh %448 : vector<1x32xf32>
    %450 = arith.mulf %440, %449 : vector<1x32xf32>
    %451 = tpu.concatenate %426, %450 in 0 : vector<1x32xf32>, vector<1x32xf32> -> vector<2x32xf32>
    %c0_124 = arith.constant 0 : index
    %c0_125 = arith.constant 0 : index
    %452 = vector.load %arg8[%c0_124, %c0_125] : memref<2x32xf32, #tpu.memory_space<vmem>>, vector<2x32xf32>
    tpu.vector_store %arg8[%c0_124, %c0_125], %451 {strides = array<i32>} : memref<2x32xf32, #tpu.memory_space<vmem>>, vector<2x32xf32>,
    %453 = tpu.concatenate %424, %448 in 0 : vector<1x32xf32>, vector<1x32xf32> -> vector<2x32xf32>
    %c0_126 = arith.constant 0 : index
    %c0_127 = arith.constant 0 : index
    %454 = vector.load %arg9[%c0_126, %c0_127] : memref<2x32xf32, #tpu.memory_space<vmem>>, vector<2x32xf32>
    tpu.vector_store %arg9[%c0_126, %c0_127], %453 {strides = array<i32>} : memref<2x32xf32, #tpu.memory_space<vmem>>, vector<2x32xf32>,
    %455 = tpu.concatenate %114, %162, %210, %258, %306, %354, %402, %450 in 0 : vector<1x32xf32>, vector<1x32xf32>, vector<1x32xf32>, vector<1x32xf32>, vector<1x32xf32>, vector<1x32xf32>, vector<1x32xf32>, vector<1x32xf32> -> vector<8x32xf32>
    %cst_128 = arith.constant dense<0.000000e+00> : vector<8x128xf32>
    %456 = tpu.matmul %455, %2, %cst_128 {dimension_numbers = #tpu.dot_dimension_numbers<[1], [0], [0], [1], [0, 0, 1, 1], [], []>} : vector<8x32xf32>, vector<32x128xf32>, vector<8x128xf32> -> vector<8x128xf32>
    %457 = vector.broadcast %5 : vector<1x128xf32> to vector<8x128xf32>
    %458 = arith.addf %456, %457 : vector<8x128xf32>
    %cst_129 = arith.constant dense<0xFF800000> : vector<8xf32>
    %459 = vector.multi_reduction <maximumf>, %458, %cst_129 [1] : vector<8x128xf32> to vector<8xf32>
    %460 = vector.shape_cast %459 : vector<8xf32> to vector<8x1xf32>
    %461 = vector.broadcast %460 : vector<8x1xf32> to vector<8x128xf32>
    %462 = arith.subf %458, %461 : vector<8x128xf32>
    %463 = math.exp %462 : vector<8x128xf32>
    %cst_130 = arith.constant dense<0.000000e+00> : vector<8xf32>
    %464 = vector.multi_reduction <add>, %463, %cst_130 [1] : vector<8x128xf32> to vector<8xf32>
    %465 = vector.shape_cast %464 : vector<8xf32> to vector<8x1xf32>
    %466 = math.log %465 : vector<8x1xf32>
    %467 = vector.broadcast %466 : vector<8x1xf32> to vector<8x128xf32>
    %468 = arith.subf %462, %467 : vector<8x128xf32>
    %c0_131 = arith.constant 0 : index
    %c0_132 = arith.constant 0 : index
    %469 = vector.load %arg7[%c0_131, %c0_132] : memref<8x128xf32, #tpu.memory_space<vmem>>, vector<8x128xf32>
    tpu.vector_store %arg7[%c0_131, %c0_132], %468 {strides = array<i32>} : memref<8x128xf32, #tpu.memory_space<vmem>>, vector<8x128xf32>,
    return
  }
}

</mosaic_0001>

<bundles_post_ra>
// kernel: embedding_lstm_forward.1
= control target key start
LH: loop header
LB: loop body
LE: loop exit
PB: predicated region body
PF: predicated region fallthrough
CT: control target
= control target key end

     0   :  { %15 = vsyncpa [#allocation5], 0  ;;  %s3803_s0 = inlined_call_operand.vmem [shape: s32[8], index: 0, kind: input, shape index: {}]   ;;  %s3804_s1 = inlined_call_operand.vmem [shape: s32[8], index: 1, kind: input, shape index: {}]   ;;  %s3805_s2 = inlined_call_operand.vmem [shape: f32[128,32], index: 2, kind: input, shape index: {}]   ;;  %s3806_s3 = inlined_call_operand.vmem [shape: f32[104,128], index: 3, kind: input, shape index: {}]   ;;  %s3807_s4 = inlined_call_operand.hbm [shape: f32[96,128], index: 4, kind: input, shape index: {}]   ;;  %s3808_s5 = inlined_call_operand.vmem [shape: f32[2,32], index: 5, kind: input, shape index: {}]   ;;  %s3809_s6 = inlined_call_operand.vmem [shape: f32[2,32], index: 6, kind: input, shape index: {}]   ;;  %s3810_s7 = inlined_call_operand.vmem [shape: f32[8,128], index: 7, kind: output, shape index: {0}]   ;;  %s3811_s8 = inlined_call_operand.hbm [shape: f32[2,32], index: 8, kind: output, shape index: {1}]   ;;  %s3812_s9 = inlined_call_operand.hbm [shape: f32[2,32], index: 9, kind: output, shape index: {2}]  }
   0x1   :  { %16 = vsyncpa [#allocation7], 0 }
   0x2   :  { %17 = vsyncpa [#allocation3], 0 }
   0x3   :  { %18 = vsyncpa [#allocation4], 0 }
   0x4   :  { %19 = vsyncpa [#allocation11], 0  ;;  %s26_s11 = sshll.u32 %s3803_s0, 4  ;;  %s36_s14 = sshll.u32 %s3804_s1, 4  ;;  %s27_s11 = int_to_ptr.vmem [resolvable:$true] %s26_s11  ;;  %s37_s14 = int_to_ptr.vmem [resolvable:$true] %s36_s14 }
   0x5   :  { %s3073_s15 = scalar_lea.vmem %s27_s11, 16  ;;  %p3078_p1 = scmp.lt.s32.totalorder %s27_s11, %s27_s11 }
   0x6   :  { %p3074_p0 = scmp.ne.s32.totalorder %s27_s11, %s3073_s15  ;;  %p3079_p2 = scmp.lt.s32.totalorder %s3073_s15, %s3073_s15 }
   0x8   :  { %p3080_p3 = por %p3079_p2, %p3078_p1 }
   0xa   :  { %p3081_p4 = pnand %p3080_p3, %p3074_p0 }
   0xc   :  { %3084 = shalt.err (!%p3081_p4)
}
   0xd   :  { %s3173_s16 = smov [#allocation2]   ;;  %s3085_s17 = scalar_lea.vmem %s37_s14, 16 }
   0xe   :  { %29 = dma.vmem_to_smem %s27_s11, 16, %s3173_s16, [#allocation5]  }
   0xf   :  { %p3086_p5 = scmp.ne.s32.totalorder %s37_s14, %s3085_s17  ;;  %p3090_p6 = scmp.lt.s32.totalorder %s37_s14, %s37_s14 }
  0x10   :  { %p3091_p7 = scmp.lt.s32.totalorder %s3085_s17, %s3085_s17 }
  0x12   :  { %p3092_p8 = por %p3091_p7, %p3090_p6 }
  0x14   :  { %p3093_p9 = pnand %p3092_p8, %p3086_p5 }
  0x16   :  { %3096 = shalt.err (!%p3093_p9)
}
  0x17   :  { %s3174_s0 = smov [#allocation6]   ;;  %s3175_s1 = smov [#allocation8]  }
  0x18   :  { %39 = dma.vmem_to_smem %s37_s14, 16, %s3174_s0, [#allocation7]  }
  0x19   :  { %s49_s18 = sshll.u32 %s3175_s1, 4  ;;  %s3097_s21 = scalar_lea.hbm %s3807_s4, 1536  ;;  %s50_s18 = int_to_ptr.vmem [resolvable:$true] %s49_s18 }
  0x1a   :  { %p3098_p10 = scmp.ne.s32.totalorder %s3807_s4, %s3097_s21  ;;  %p3101_p11 = scmp.lt.u32.totalorder %s3097_s21, %s3807_s4 }
  0x1c   :  { %p3103_p12 = pnand %p3101_p11, %p3098_p10 }
  0x1e   :  { %3106 = shalt.err (!%p3103_p12)
}
  0x1f   :  { %s3107_s26 = scalar_lea.vmem %s50_s18, 1536  ;;  %p3112_p0 = scmp.lt.s32.totalorder %s50_s18, %s50_s18 }
  0x20   :  { %p3108_p13 = scmp.ne.s32.totalorder %s50_s18, %s3107_s26  ;;  %p3113_p1 = scmp.lt.s32.totalorder %s3107_s26, %s3107_s26 }
  0x22   :  { %p3114_p2 = por %p3113_p1, %p3112_p0 }
  0x24   :  { %p3115_p3 = pnand %p3114_p2, %p3108_p13 }
  0x26   :  { %3118 = shalt.err (!%p3115_p3)
}
  0x27   :  { %s3176_s27 = smov 128   ;;  %s3177_s28 = smov 8  }
  0x28   :  { %55 = dma.hbm_to_vmem [thread:$0]  %s3807_s4, 1536, %s50_s18, [#allocation3], %s3176_s27, %s3176_s27, %s3177_s28  }
  0x29   :  { %3163 = dma.done.wait [#allocation5], 16  }
  0x2a   :  { %3164 = vsyncadd [#allocation5], 4294967280 }
  0x2b   :  { %3165 = dma.done.wait [#allocation7], 16  }
  0x2c   :  { %3166 = vsyncadd [#allocation7], 4294967280 }
  0x2d   :  { %3167 = dma.done.wait [#allocation3], 1536  }
  0x2e   :  { %3168 = vsyncadd [#allocation3], 4294965760 }
  0x2f   :  { %69 = sfence }
  0x30   :  { %v74_v0 = vld [vmem:[%s3806_s3 + $0x20] sm:$0xff]  ;;  %v75_v1 = vld [vmem:[%s3806_s3 + $0x28] sm:$0xff]  ;;  %v3178_v3 = vmov 0.0|0.0   ;;  %v76_v6 = vld [vmem:[%s3806_s3 + $0x30] sm:$0xff]  ;;  %s3274_s19 = sld [smem:[#allocation6]]  ;;  %vm3179_vm0 = vmmov 0  }
  0x31   :  { %v70_v2 = vld [vmem:[%s3806_s3] sm:$0xff]  ;;  %2797 = vmatprep.subr.bf16.mxu0 %v3178_v3  ;;  %v2798_v4 = vpack.c.bf16 %v75_v1, %v74_v0  ;;  %2803 = vmatprep.subr.bf16.mxu1 %v3178_v3  ;;  %v71_v5 = vld [vmem:[%s3806_s3 + $0x8] sm:$0xff]  ;;  %v77_v7 = vld [vmem:[%s3806_s3 + $0x38] sm:$0xff]  ;;  %v3180_v11 = vmov 0.0   ;;  %s2331_s24 = sld [smem:[#allocation6 + $0x1]]  ;;  %s2333_s25 = sld [smem:[#allocation6 + $0x2]] }
  0x32   :  { %v2804_v8 = vpack.c.bf16 %v71_v5, %v70_v2  ;;  %v72_v9 = vld [vmem:[%s3806_s3 + $0x10] sm:$0xff]  ;;  %v73_v10 = vld [vmem:[%s3806_s3 + $0x18] sm:$0xff]  ;;  %2532 = vmatprep.mubr.msk.f32.mxu0 %vm3179_vm0, %v3180_v11  ;;  %2543 = vmatprep.mubr.msk.f32.mxu1 %vm3179_vm0, %v3180_v11  ;;  %v2801_v12 = vpack.c.bf16 %v77_v7, %v76_v6  ;;  %s3286_s26 = sld [smem:[#allocation6 + $0x3]]  ;;  %s3288_s27 = sld [smem:[#allocation6 + $0x4]]  ;;  %vm166_vm1 = vcmask 1040384   ;;  %vm168_vm2 = vcmask 1041408  }
  0x33   :  { %2799 = vmatpush3.bf16.msra.mxu0 %v2798_v4  ;;  %v2807_v13 = vpack.c.bf16 %v73_v10, %v72_v9  ;;  %s3291_s28 = sld [smem:[#allocation6 + $0x5]]  ;;  %s3293_s29 = sld [smem:[#allocation6 + $0x6]]  ;;  %vm170_vm3 = vcmask 1042432   ;;  %vm172_vm4 = vcmask 1043456   ;;  %vm174_vm5 = vcmask 1044480   ;;  %v85_v28 = vld [vmem:[#allocation8] sm:$0xff] }
  0x34   :  { %2805 = vmatpush3.bf16.msra.mxu1 %v2804_v8  ;;  %2800 = vmatprep.subr.bf16.mxu0 %v3178_v3  ;;  %s3296_s30 = sld [smem:[#allocation6 + $0x7]]  ;;  %s3298_s10 = sld [smem:[#allocation2]]  ;;  %vm176_vm6 = vcmask 1045504   ;;  %v86_v29 = vld [vmem:[#allocation8 + $0x8] sm:$0xff]  ;;  %vm178_vm7 = vcmask 1046528   ;;  %vm208_vm8 = vcmask 261120  }
  0x35   :  { %2806 = vmatprep.subr.bf16.mxu1 %v3178_v3  ;;  %s3300_s11 = sld [smem:[#allocation2 + $0x1]]  ;;  %s3306_s15 = sld [smem:[#allocation2 + $0x2]]  ;;  %v3353_v40 = vpack.c.bf16 %v86_v29, %v85_v28  ;;  %v87_v43 = vld [vmem:[#allocation8 + $0x10] sm:$0xff]  ;;  %v88_v44 = vld [vmem:[#allocation8 + $0x18] sm:$0xff]  ;;  %v360_v60 = vld [vmem:[%s3808_s5] sm:$0x1] }
  0x36   :  { %s101_s14 = scalar_lea.vmem %s3805_s2, %s3274_s19  ;;  %s2336_s22 = sld [smem:[#allocation2 + $0x4]]  ;;  %v3366_v47 = vpack.c.bf16 %v88_v44, %v87_v43  ;;  %v2346_v6 = vld [vmem:[%s3806_s3 + $0x60] ss:$0 sm:$0xff]  ;;  %v362_v44 = vld [vmem:[%s3808_s5 + $0x1] sm:$0x1]  ;;  %vm482_vm9 = vcmask 523264  }
  0x37   :  { %2802 = vmatpush3.bf16.msra.mxu0 %v2801_v12  ;;  %s107_s17 = scalar_lea.vmem %s3805_s2, %s2331_s24  ;;  %s113_s18 = scalar_lea.vmem %s3805_s2, %s2333_s25  ;;  %v102_v14 = vld [vmem:[%s101_s14] sm:$0x1]  ;;  %vm2157_vm10 = vcmask 254976  }
  0x38   :  { %2808 = vmatpush3.bf16.msra.mxu1 %v2807_v13  ;;  %2809 = vmatprep.subr.bf16.mxu0 %v3178_v3  ;;  %v108_v15 = vld [vmem:[%s107_s17] sm:$0x1]  ;;  %s119_s21 = scalar_lea.vmem %s3805_s2, %s3286_s26  ;;  %s125_s24 = scalar_lea.vmem %s3805_s2, %s3288_s27 }
  0x39   :  { %v114_v16 = vld [vmem:[%s113_s18] sm:$0x1]  ;;  %2815 = vmatprep.subr.bf16.mxu1 %v3178_v3  ;;  %s131_s13 = scalar_lea.vmem %s3805_s2, %s3291_s28  ;;  %s137_s16 = scalar_lea.vmem %s3805_s2, %s3293_s29  ;;  %v181_v19 = vrot.slane %v108_v15, 7 }
  0x3a   :  { %v120_v17 = vld [vmem:[%s119_s21] sm:$0x1]  ;;  %v184_v20 = vrot.slane %v114_v16, 6  ;;  %s143_s17 = scalar_lea.vmem %s3805_s2, %s3296_s30  ;;  %s98_s29 = scalar_lea.vmem %s3805_s2, %s3298_s10 }
  0x3b   :  { %v126_v18 = vld [vmem:[%s125_s24] sm:$0x1]  ;;  %v187_v23 = vrot.slane %v120_v17, 5  ;;  %v201_v27 = vsel %vm166_vm1, %v102_v14, %v181_v19  ;;  %s104_s19 = scalar_lea.vmem %s3805_s2, %s3300_s11  ;;  %s110_s21 = scalar_lea.vmem %s3805_s2, %s3306_s15 }
  0x3c   :  { %v132_v21 = vld [vmem:[%s131_s13] sm:$0x1]  ;;  %v190_v24 = vrot.slane %v126_v18, 4  ;;  %v202_v32 = vsel %vm168_vm2, %v201_v27, %v184_v20  ;;  %s2334_s10 = sld [smem:[#allocation2 + $0x3]]  ;;  %s2338_s11 = sld [smem:[#allocation2 + $0x5]] }
  0x3d   :  { %v138_v22 = vld [vmem:[%s137_s16] sm:$0x1]  ;;  %v193_v26 = vrot.slane %v132_v21, 3  ;;  %v203_v35 = vsel %vm170_vm3, %v202_v32, %v187_v23  ;;  %s2340_s23 = sld [smem:[#allocation2 + $0x6]]  ;;  %s2342_s24 = sld [smem:[#allocation2 + $0x7]]  ;;  %v91_v32 = vld [vmem:[#allocation8 + $0x30] sm:$0xff] }
  0x3e   :  { %v144_v25 = vld [vmem:[%s143_s17] sm:$0x1]  ;;  %v196_v30 = vrot.slane %v138_v22, 2  ;;  %v204_v37 = vsel %vm172_vm4, %v203_v35, %v190_v24  ;;  %s122_s4 = scalar_lea.vmem %s3805_s2, %s2336_s22 }
  0x3f   :  { %v199_v31 = vrot.slane %v144_v25, 1  ;;  %v99_v33 = vld [vmem:[%s98_s29] sm:$0x1]  ;;  %v205_v39 = vsel %vm174_vm5, %v204_v37, %v193_v26  ;;  %v94_v37 = vld [vmem:[#allocation8 + $0x48] sm:$0xff] }
  0x40   :  { %v105_v34 = vld [vmem:[%s104_s19] sm:$0x1]  ;;  %v206_v41 = vsel %vm176_vm6, %v205_v39, %v196_v30  ;;  %v95_v39 = vld [vmem:[#allocation8 + $0x50] sm:$0xff] }
  0x41   :  { %v111_v36 = vld [vmem:[%s110_s21] sm:$0x1]  ;;  %v146_v38 = vrot.slane %v105_v34, 7  ;;  %v207_v45 = vsel %vm178_vm7, %v206_v41, %v199_v31  ;;  %s3181_s21 = smov 64   ;;  %v90_v31 = vld [vmem:[#allocation8 + $0x28] sm:$0xff]  ;;  %v92_v34 = vld [vmem:[#allocation8 + $0x38] sm:$0xff] }
  0x42   :  { %v149_v42 = vrot.slane %v111_v36, 6  ;;  %2533 = vmatmul.mubr.msk.f32.vlgmr.msra.gmra.mrb[0].mxu0 %vm208_vm8, %v207_v45  ;;  %s116_s12 = scalar_lea.vmem %s3805_s2, %s2334_s10  ;;  %v123_v49 = vld [vmem:[%s122_s4] sm:$0x1]  ;;  %s128_s27 = scalar_lea.vmem %s3805_s2, %s2338_s11  ;;  %v3420_v35 = vpack.c.bf16 %v92_v34, %v91_v32  ;;  %v96_v41 = vld [vmem:[#allocation8 + $0x58] sm:$0xff] }
  0x43   :  { %v167_v46 = vsel %vm166_vm1, %v99_v33, %v146_v38  ;;  %2811 = vmatpush3.bf16.msra.mxu0 %v3353_v40  ;;  %2554 = vmatprep.mubr.msk.f32.mxu0 %vm3179_vm0, %v3180_v11  ;;  %v117_v48 = vld [vmem:[%s116_s12] sm:$0x1]  ;;  %s134_s0 = scalar_lea.vmem %s3805_s2, %s2340_s23  ;;  %s140_s18 = scalar_lea.vmem %s3805_s2, %s2342_s24  ;;  %v155_v54 = vrot.slane %v123_v49, 4  ;;  %v3429_v43 = vpack.c.bf16 %v96_v41, %v95_v39 }
  0x44   :  { %v169_v50 = vsel %vm168_vm2, %v167_v46, %v149_v42  ;;  %2812 = vmatprep.subr.bf16.mxu0 %v3178_v3  ;;  %v129_v51 = vld [vmem:[%s128_s27] sm:$0x1]  ;;  %v152_v53 = vrot.slane %v117_v48, 5  ;;  %s3182_s11 = smov 32  }
  0x45   :  { %v135_v52 = vld [vmem:[%s134_s0] sm:$0x1]  ;;  %v158_v56 = vrot.slane %v129_v51, 3  ;;  %v3461_v51 = vld [vmem:[%s3806_s3 + $0x61] sm:$0x1] }
  0x46   :  { %v141_v55 = vld [vmem:[%s140_s18] sm:$0x1]  ;;  %v161_v57 = vrot.slane %v135_v52, 2  ;;  %v171_v59 = vsel %vm170_vm3, %v169_v50, %v152_v53  ;;  %s3183_s18 = smov 96  }
  0x47   :  { %v164_v58 = vrot.slane %v141_v55, 1  ;;  %2814 = vmatpush3.bf16.msra.mxu0 %v3366_v47  ;;  %v173_v61 = vsel %vm172_vm4, %v171_v59, %v155_v54  ;;  %v361_v23 = vld [vmem:[%s3809_s6] sm:$0x1] }
  0x48   :  { %2827 = vmatprep.subr.bf16.mxu0 %v3178_v3  ;;  %v175_v62 = vsel %vm174_vm5, %v173_v61, %v158_v56  ;;  %v89_v30 = vld [vmem:[#allocation8 + $0x20] sm:$0xff] }
  0x49   :  { %v177_v63 = vsel %vm176_vm6, %v175_v62, %v161_v57  ;;  %v3417_v33 = vpack.c.bf16 %v90_v31, %v89_v30  ;;  %v93_v36 = vld [vmem:[#allocation8 + $0x40] sm:$0xff] }
  0x4a   :  { %2555 = vmatmul.mubr.msk.f32.vlgmr.msra.gmra.mrb[2].mxu0 %vm208_vm8, %v360_v60  ;;  %v179_v0 = vsel %vm178_vm7, %v177_v63, %v164_v58  ;;  %v3424_v38 = vpack.c.bf16 %v94_v37, %v93_v36 }
  0x4b   :  { %2829 = vmatpush3.bf16.msra.mxu0 %v3353_v40  ;;  %2584 = vmatprep.mubr.msk.f32.mxu0 %vm3179_vm0, %v3180_v11 }
  0x4c   :  { %2544 = vmatmul.mubr.msk.f32.vlgmr.msra.gmra.mrb[0].mxu1 %vm208_vm8, %v179_v0  ;;  %2830 = vmatprep.subr.bf16.mxu0 %v3178_v3 }
  0x4d   :  { %2573 = vmatprep.mubr.msk.f32.mxu1 %vm3179_vm0, %v3180_v11  ;;  %2817 = vmatpush3.bf16.msra.mxu1 %v3417_v33 }
  0x4e   :  { %2818 = vmatprep.subr.bf16.mxu1 %v3178_v3 }
  0x4f   :  { %2832 = vmatpush3.bf16.msra.mxu0 %v3366_v47 }
  0x50   :  { %2833 = vmatprep.subr.bf16.mxu0 %v3178_v3 }
  0x51   :  { %2820 = vmatpush3.bf16.msra.mxu1 %v3420_v35 }
  0x52   :  { %2821 = vmatprep.subr.bf16.mxu1 %v3178_v3 }
  0x55   :  { %2823 = vmatpush3.bf16.msra.mxu1 %v3424_v38 }
  0x56   :  { %2824 = vmatprep.subr.bf16.mxu1 %v3178_v3 }
  0x59   :  { %2826 = vmatpush3.bf16.msra.mxu1 %v3429_v43 }
  0x5a   :  { %2845 = vmatprep.subr.bf16.mxu1 %v3178_v3 }
 0x115   :  { %v278_v1 = vpop.f32.mrb[0].mxu0 }
 0x116   :  { %v2534_v2 = vpop.f32.mrb[1].mxu0 }
 0x11d   :  { %v433_v4 = vpop.f32.mrb[2].mxu0 }
 0x11e   :  { %v2556_v5 = vpop.f32.mrb[3].mxu0 }
 0x11f   :  { %v351_v7 = vpop.f32.mrb[0].mxu1 }
 0x120   :  { %v352_v8 = vadd.f32 %v351_v7, %v278_v1  ;;  %v2545_v9 = vpop.f32.mrb[1].mxu1 }
 0x122   :  { %v3404_v10 = vadd.f32 %v2346_v6, %v352_v8 }
 0x124   :  { %v437_v12 = vadd.f32 %v433_v4, %v3404_v10 }
 0x126   :  { %v438_v13 = vmul.f32 2.0, %v437_v12 }
 0x128   :  { %v440_v14 = vrot.slane %v438_v13, 7 }
 0x12a   :  { %v442_v15 = vsel %vm166_vm1, %v437_v12, %v440_v14 }
 0x12b   :  { %v2348_v16 = vmul.f32 -1.442695, %v442_v15 }
 0x12d   :  { %2972 = vpow2.f32 %v2348_v16 }
 0x137   :  { %v2973_v17 = vpop.eup %2972 }
 0x138   :  { %v446_v18 = vadd.f32 1.0, %v2973_v17 }
 0x13a   :  { %2974 = vrcp.f32 %v446_v18  ;;  %v363_v18 = vld [vmem:[%s3809_s6 + $0x1] sm:$0x1] }
 0x144   :  { %v2975_v19 = vpop.eup %2974 }
 0x145   :  { %v449_v20 = vmul.f32 2.0, %v2975_v19 }
 0x147   :  { %v2349_v21 = vadd.f32 -1.0, %v449_v20 }
 0x149   :  { %v457_v22 = vrot.slane %v2349_v21, 1 }
 0x14b   :  { %458 = vrot.lane.b32.xlu0 %v457_v22, %s3181_s21 }
 0x14f   :  { %452 = vrot.lane.b32.xlu0 %v361_v23, %s3182_s11 }
 0x1bd   :  { %v459_v24 = vpop.permute.xlu0 %458 }
 0x1be   :  { %v461_v25 = vmul.f32 %v2975_v19, %v459_v24 }
 0x1c0   :  { %463 = vrot.lane.b32.xlu1 %v461_v25, %s3182_s11 }
 0x1c1   :  { %v453_v26 = vpop.permute.xlu0 %452 }
 0x1c2   :  { %v455_v27 = vmul.f32 %v2975_v19, %v453_v26 }
 0x232   :  { %v464_v28 = vpop.permute.xlu1 %463 }
 0x233   :  { %v3414_v29 = vadd.f32 %v464_v28, %v455_v27 }
 0x235   :  { %2976 = vtanh.f32 %v3414_v29 }
 0x23f   :  { %v2977_v42 = vpop.eup %2976 }
 0x240   :  { %469 = vrot.lane.b32.xlu1 %v2977_v42, %s3181_s21 }
 0x244   :  { %478 = vrot.lane.b32.xlu1 %v362_v44, %s3182_s11 }
 0x2b2   :  { %v470_v45 = vpop.permute.xlu1 %469 }
 0x2b3   :  { %v472_v46 = vmul.f32 %v2975_v19, %v470_v45 }
 0x2b5   :  { %474 = vrot.lane.b32.xlu0 %v472_v46, %s3182_s11 }
 0x2b6   :  { %v479_v48 = vpop.permute.xlu1 %478 }
 0x327   :  { %v475_v49 = vpop.permute.xlu0 %474 }
 0x328   :  { %v481_v50 = vsel %vm208_vm8, %v475_v49, %v479_v48  ;;  %2585 = vmatmul.mubr.msk.f32.vlgmr.msra.gmra.mrb[4].mxu0 %vm208_vm8, %v475_v49 }
 0x329   :  { %2574 = vmatmul.mubr.msk.f32.vlgmr.msra.gmra.mrb[2].mxu1 %vm482_vm9, %v481_v50  ;;  %2835 = vmatpush3.bf16.msra.mxu0 %v3417_v33 }
 0x32a   :  { %2836 = vmatprep.subr.bf16.mxu0 %v3178_v3  ;;  %2847 = vmatpush3.bf16.msra.mxu1 %v3353_v40 }
 0x32b   :  { %2848 = vmatprep.subr.bf16.mxu1 %v3178_v3  ;;  %2614 = vmatprep.mubr.msk.f32.mxu1 %vm3179_vm0, %v3180_v11 }
 0x32c   :  { %2603 = vmatprep.mubr.msk.f32.mxu0 %vm3179_vm0, %v3180_v11 }
 0x32d   :  { %2838 = vmatpush3.bf16.msra.mxu0 %v3420_v35 }
 0x32e   :  { %2839 = vmatprep.subr.bf16.mxu0 %v3178_v3  ;;  %2850 = vmatpush3.bf16.msra.mxu1 %v3366_v47 }
 0x32f   :  { %2851 = vmatprep.subr.bf16.mxu1 %v3178_v3 }
 0x331   :  { %2841 = vmatpush3.bf16.msra.mxu0 %v3424_v38 }
 0x332   :  { %2842 = vmatprep.subr.bf16.mxu0 %v3178_v3 }
 0x335   :  { %2844 = vmatpush3.bf16.msra.mxu0 %v3429_v43 }
 0x336   :  { %2863 = vmatprep.subr.bf16.mxu0 %v3178_v3 }
 0x3fb   :  { %v659_v52 = vpop.f32.mrb[4].mxu0 }
 0x3fc   :  { %v664_v53 = vrot.slane %v659_v52, 7  ;;  %v552_v54 = vpop.f32.mrb[2].mxu1  ;;  %v2586_v55 = vpop.f32.mrb[5].mxu0 }
 0x3fd   :  { %v553_v56 = vadd.f32 %v552_v54, %v3461_v51  ;;  %v2575_v57 = vpop.f32.mrb[3].mxu1 }
 0x3fe   :  { %v666_v58 = vadd.f32 %v664_v53, %v3404_v10 }
 0x3ff   :  { %v556_v59 = vmul.f32 2.0, %v553_v56 }
 0x400   :  { %v667_v60 = vmul.f32 2.0, %v666_v58  ;;  %v669_v61 = vrot.slane %v666_v58, 1 }
 0x401   :  { %v558_v62 = vrot.slane %v556_v59, 7 }
 0x402   :  { %v671_v63 = vsel %vm166_vm1, %v669_v61, %v667_v60 }
 0x403   :  { %v2354_v0 = vmul.f32 -1.442695, %v671_v63  ;;  %v560_v1 = vsel %vm166_vm1, %v553_v56, %v558_v62 }
 0x404   :  { %v2351_v2 = vmul.f32 -1.442695, %v560_v1 }
 0x405   :  { %2978 = vpow2.f32 %v2354_v0 }
 0x406   :  { %2980 = vpow2.f32 %v2351_v2 }
 0x40f   :  { %v2979_v4 = vpop.eup %2978 }
 0x410   :  { %v2981_v5 = vpop.eup %2980  ;;  %v675_v6 = vadd.f32 1.0, %v2979_v4 }
 0x411   :  { %v564_v7 = vadd.f32 1.0, %v2981_v5 }
 0x412   :  { %2982 = vrcp.f32 %v675_v6 }
 0x413   :  { %2984 = vrcp.f32 %v564_v7 }
 0x41c   :  { %v2983_v8 = vpop.eup %2982 }
 0x41d   :  { %v2985_v9 = vpop.eup %2984  ;;  %v678_v12 = vmul.f32 2.0, %v2983_v8  ;;  %v680_v23 = vmul.f32 %v2983_v8, %v3414_v29 }
 0x41e   :  { %v567_v13 = vmul.f32 2.0, %v2985_v9 }
 0x41f   :  { %v2355_v14 = vadd.f32 -1.0, %v678_v12 }
 0x420   :  { %v2352_v15 = vadd.f32 -1.0, %v567_v13 }
 0x421   :  { %v682_v16 = vrot.slane %v2355_v14, 1 }
 0x422   :  { %v575_v17 = vrot.slane %v2352_v15, 1 }
 0x423   :  { %683 = vrot.lane.b32.xlu0 %v682_v16, %s3181_s21 }
 0x424   :  { %576 = vrot.lane.b32.xlu1 %v575_v17, %s3181_s21 }
 0x428   :  { %570 = vrot.lane.b32.xlu1 %v363_v18, %s3182_s11 }
 0x495   :  { %v684_v19 = vpop.permute.xlu0 %683 }
 0x496   :  { %v686_v20 = vmul.f32 %v2983_v8, %v684_v19  ;;  %v577_v21 = vpop.permute.xlu1 %576 }
 0x497   :  { %v579_v22 = vmul.f32 %v2985_v9, %v577_v21 }
 0x498   :  { %688 = vrot.lane.b32.xlu0 %v686_v20, %s3182_s11 }
 0x49a   :  { %v571_v24 = vpop.permute.xlu1 %570 }
 0x49b   :  { %v573_v27 = vmul.f32 %v2985_v9, %v571_v24 }
 0x49c   :  { %581 = vrot.lane.b32.xlu0 %v579_v22, %s3182_s11 }
 0x50a   :  { %v689_v25 = vpop.permute.xlu0 %688 }
 0x50b   :  { %v3476_v26 = vadd.f32 %v689_v25, %v680_v23 }
 0x50d   :  { %2986 = vtanh.f32 %v3476_v26 }
 0x50e   :  { %v582_v28 = vpop.permute.xlu0 %581 }
 0x50f   :  { %v3479_v30 = vadd.f32 %v582_v28, %v573_v27 }
 0x511   :  { %2988 = vtanh.f32 %v3479_v30 }
 0x517   :  { %v2987_v31 = vpop.eup %2986 }
 0x518   :  { %694 = vrot.lane.b32.xlu1 %v2987_v31, %s3181_s21 }
 0x51b   :  { %v2989_v32 = vpop.eup %2988 }
 0x51c   :  { %587 = vrot.lane.b32.xlu0 %v2989_v32, %s3181_s21 }
 0x58a   :  { %v695_v34 = vpop.permute.xlu1 %694 }
 0x58b   :  { %v697_v29 = vmul.f32 %v2983_v8, %v695_v34 }
 0x58d   :  { %699 = vrot.lane.b32.xlu1 %v697_v29, %s3182_s11 }
 0x58e   :  { %v588_v36 = vpop.permute.xlu0 %587 }
 0x58f   :  { %v3485_v37 = vmul.f32 %v2985_v9, %v588_v36 }
 0x591   :  { %703 = vrot.lane.b32.xlu0 %v3485_v37, %s3181_s21 }
 0x5ff   :  { %v700_v39 = vpop.permute.xlu1 %699 }
 0x600   :  { %2615 = vmatmul.mubr.msk.f32.vlgmr.msra.gmra.mrb[4].mxu1 %vm208_vm8, %v700_v39 }
 0x601   :  { %2853 = vmatpush3.bf16.msra.mxu1 %v3417_v33  ;;  %2633 = vmatprep.mubr.msk.f32.mxu1 %vm3179_vm0, %v3180_v11 }
 0x602   :  { %2854 = vmatprep.subr.bf16.mxu1 %v3178_v3 }
 0x603   :  { %v704_v41 = vpop.permute.xlu0 %703 }
 0x604   :  { %v706_v42 = vsel %vm208_vm8, %v700_v39, %v704_v41 }
 0x605   :  { %2604 = vmatmul.mubr.msk.f32.vlgmr.msra.gmra.mrb[6].mxu0 %vm482_vm9, %v706_v42  ;;  %2856 = vmatpush3.bf16.msra.mxu1 %v3420_v35 }
 0x606   :  { %2865 = vmatpush3.bf16.msra.mxu0 %v3353_v40  ;;  %2857 = vmatprep.subr.bf16.mxu1 %v3178_v3 }
 0x607   :  { %2866 = vmatprep.subr.bf16.mxu0 %v3178_v3  ;;  %2644 = vmatprep.mubr.msk.f32.mxu0 %vm3179_vm0, %v3180_v11 }
 0x609   :  { %2859 = vmatpush3.bf16.msra.mxu1 %v3424_v38 }
 0x60a   :  { %2868 = vmatpush3.bf16.msra.mxu0 %v3366_v47  ;;  %2860 = vmatprep.subr.bf16.mxu1 %v3178_v3 }
 0x60b   :  { %2869 = vmatprep.subr.bf16.mxu0 %v3178_v3 }
 0x60d   :  { %2862 = vmatpush3.bf16.msra.mxu1 %v3429_v43 }
 0x60e   :  { %2881 = vmatprep.subr.bf16.mxu1 %v3178_v3 }
 0x6d3   :  { %v879_v44 = vpop.f32.mrb[4].mxu1 }
 0x6d4   :  { %v884_v45 = vrot.slane %v879_v44, 6  ;;  %v2616_v46 = vpop.f32.mrb[5].mxu1 }
 0x6d6   :  { %v886_v48 = vadd.f32 %v884_v45, %v3404_v10 }
 0x6d8   :  { %v887_v49 = vmul.f32 2.0, %v886_v48  ;;  %v776_v50 = vpop.f32.mrb[6].mxu0  ;;  %v889_v54 = vrot.slane %v886_v48, 2 }
 0x6d9   :  { %v777_v52 = vadd.f32 %v776_v50, %v3461_v51  ;;  %v2605_v53 = vpop.f32.mrb[7].mxu0 }
 0x6da   :  { %v892_v55 = vrot.slane %v887_v49, 1 }
 0x6db   :  { %v780_v56 = vmul.f32 2.0, %v777_v52 }
 0x6dc   :  { %v894_v57 = vsel %vm166_vm1, %v889_v54, %v892_v55 }
 0x6dd   :  { %v2360_v58 = vmul.f32 -1.442695, %v894_v57  ;;  %v782_v59 = vrot.slane %v780_v56, 7 }
 0x6df   :  { %2990 = vpow2.f32 %v2360_v58  ;;  %v784_v60 = vsel %vm166_vm1, %v777_v52, %v782_v59 }
 0x6e0   :  { %v2357_v61 = vmul.f32 -1.442695, %v784_v60 }
 0x6e2   :  { %2992 = vpow2.f32 %v2357_v61 }
 0x6e9   :  { %v2991_v62 = vpop.eup %2990 }
 0x6ea   :  { %v898_v63 = vadd.f32 1.0, %v2991_v62 }
 0x6ec   :  { %v2993_v0 = vpop.eup %2992  ;;  %2994 = vrcp.f32 %v898_v63 }
 0x6ed   :  { %v788_v1 = vadd.f32 1.0, %v2993_v0 }
 0x6ef   :  { %2996 = vrcp.f32 %v788_v1 }
 0x6f6   :  { %v2995_v2 = vpop.eup %2994 }
 0x6f7   :  { %v901_v4 = vmul.f32 2.0, %v2995_v2  ;;  %v903_v17 = vmul.f32 %v2995_v2, %v3476_v26 }
 0x6f9   :  { %v2997_v5 = vpop.eup %2996  ;;  %v2361_v6 = vadd.f32 -1.0, %v901_v4 }
 0x6fa   :  { %v791_v7 = vmul.f32 2.0, %v2997_v5  ;;  %v793_v20 = vmul.f32 %v2997_v5, %v3479_v30 }
 0x6fb   :  { %v905_v8 = vrot.slane %v2361_v6, 1 }
 0x6fc   :  { %v2358_v9 = vadd.f32 -1.0, %v791_v7 }
 0x6fd   :  { %906 = vrot.lane.b32.xlu1 %v905_v8, %s3181_s21 }
 0x6fe   :  { %v795_v12 = vrot.slane %v2358_v9, 1 }
 0x700   :  { %796 = vrot.lane.b32.xlu0 %v795_v12, %s3181_s21 }
 0x76f   :  { %v907_v13 = vpop.permute.xlu1 %906 }
 0x770   :  { %v909_v14 = vmul.f32 %v2995_v2, %v907_v13 }
 0x772   :  { %v797_v15 = vpop.permute.xlu0 %796  ;;  %911 = vrot.lane.b32.xlu1 %v909_v14, %s3182_s11 }
 0x773   :  { %v799_v16 = vmul.f32 %v2997_v5, %v797_v15 }
 0x775   :  { %801 = vrot.lane.b32.xlu0 %v799_v16, %s3182_s11 }
 0x7e4   :  { %v912_v18 = vpop.permute.xlu1 %911 }
 0x7e5   :  { %v3517_v19 = vadd.f32 %v912_v18, %v903_v17 }
 0x7e7   :  { %2998 = vtanh.f32 %v3517_v19  ;;  %v802_v21 = vpop.permute.xlu0 %801 }
 0x7e8   :  { %v3521_v22 = vadd.f32 %v802_v21, %v793_v20 }
 0x7ea   :  { %3000 = vtanh.f32 %v3521_v22 }
 0x7f1   :  { %v2999_v23 = vpop.eup %2998 }
 0x7f2   :  { %917 = vrot.lane.b32.xlu1 %v2999_v23, %s3181_s21 }
 0x7f4   :  { %v3001_v24 = vpop.eup %3000 }
 0x7f5   :  { %807 = vrot.lane.b32.xlu0 %v3001_v24, %s3181_s21 }
 0x864   :  { %v918_v25 = vpop.permute.xlu1 %917 }
 0x865   :  { %v920_v26 = vmul.f32 %v2995_v2, %v918_v25 }
 0x867   :  { %v808_v27 = vpop.permute.xlu0 %807  ;;  %922 = vrot.lane.b32.xlu1 %v920_v26, %s3182_s11 }
 0x868   :  { %v3527_v28 = vmul.f32 %v2997_v5, %v808_v27 }
 0x86a   :  { %926 = vrot.lane.b32.xlu0 %v3527_v28, %s3181_s21  ;;  %v2168_v21 = vrot.slane %v3527_v28, 7 }
 0x86c   :  { %v2182_v25 = vsel %vm166_vm1, %v3485_v37, %v2168_v21 }
 0x8d9   :  { %v923_v30 = vpop.permute.xlu1 %922 }
 0x8da   :  { %2645 = vmatmul.mubr.msk.f32.vlgmr.msra.gmra.mrb[8].mxu0 %vm208_vm8, %v923_v30 }
 0x8db   :  { %2871 = vmatpush3.bf16.msra.mxu0 %v3417_v33  ;;  %2663 = vmatprep.mubr.msk.f32.mxu0 %vm3179_vm0, %v3180_v11 }
 0x8dc   :  { %v927_v31 = vpop.permute.xlu0 %926  ;;  %2872 = vmatprep.subr.bf16.mxu0 %v3178_v3 }
 0x8dd   :  { %v929_v32 = vsel %vm208_vm8, %v923_v30, %v927_v31 }
 0x8de   :  { %2634 = vmatmul.mubr.msk.f32.vlgmr.msra.gmra.mrb[6].mxu1 %vm482_vm9, %v929_v32 }
 0x8df   :  { %2874 = vmatpush3.bf16.msra.mxu0 %v3420_v35  ;;  %2883 = vmatpush3.bf16.msra.mxu1 %v3353_v40 }
 0x8e0   :  { %2875 = vmatprep.subr.bf16.mxu0 %v3178_v3  ;;  %2884 = vmatprep.subr.bf16.mxu1 %v3178_v3 }
 0x8e1   :  { %2674 = vmatprep.mubr.msk.f32.mxu1 %vm3179_vm0, %v3180_v11 }
 0x8e3   :  { %2877 = vmatpush3.bf16.msra.mxu0 %v3424_v38  ;;  %2886 = vmatpush3.bf16.msra.mxu1 %v3366_v47 }
 0x8e4   :  { %2878 = vmatprep.subr.bf16.mxu0 %v3178_v3  ;;  %2887 = vmatprep.subr.bf16.mxu1 %v3178_v3 }
 0x8e7   :  { %2880 = vmatpush3.bf16.msra.mxu0 %v3429_v43 }
 0x8e8   :  { %2899 = vmatprep.subr.bf16.mxu0 %v3178_v3 }
 0x9ad   :  { %v1102_v34 = vpop.f32.mrb[8].mxu0 }
 0x9ae   :  { %v1107_v29 = vrot.slane %v1102_v34, 5  ;;  %v2646_v36 = vpop.f32.mrb[9].mxu0 }
 0x9b0   :  { %v1109_v39 = vadd.f32 %v1107_v29, %v3404_v10 }
 0x9b1   :  { %v999_v41 = vpop.f32.mrb[6].mxu1 }
 0x9b2   :  { %v1110_v42 = vmul.f32 2.0, %v1109_v39  ;;  %v1000_v44 = vadd.f32 %v999_v41, %v3461_v51  ;;  %v2635_v45 = vpop.f32.mrb[7].mxu1  ;;  %v1112_v46 = vrot.slane %v1109_v39, 3 }
 0x9b4   :  { %v1115_v48 = vrot.slane %v1110_v42, 2  ;;  %v1003_v49 = vmul.f32 2.0, %v1000_v44 }
 0x9b6   :  { %v1117_v50 = vsel %vm166_vm1, %v1112_v46, %v1115_v48  ;;  %v1005_v52 = vrot.slane %v1003_v49, 7 }
 0x9b7   :  { %v2366_v53 = vmul.f32 -1.442695, %v1117_v50 }
 0x9b8   :  { %v1007_v54 = vsel %vm166_vm1, %v1000_v44, %v1005_v52 }
 0x9b9   :  { %3002 = vpow2.f32 %v2366_v53  ;;  %v2363_v55 = vmul.f32 -1.442695, %v1007_v54 }
 0x9bb   :  { %3004 = vpow2.f32 %v2363_v55 }
 0x9c3   :  { %v3003_v56 = vpop.eup %3002 }
 0x9c4   :  { %v1121_v57 = vadd.f32 1.0, %v3003_v56 }
 0x9c5   :  { %v3005_v58 = vpop.eup %3004 }
 0x9c6   :  { %3006 = vrcp.f32 %v1121_v57  ;;  %v1011_v59 = vadd.f32 1.0, %v3005_v58 }
 0x9c8   :  { %3008 = vrcp.f32 %v1011_v59 }
 0x9d0   :  { %v3007_v60 = vpop.eup %3006 }
 0x9d1   :  { %v1124_v61 = vmul.f32 2.0, %v3007_v60  ;;  %v1126_v9 = vmul.f32 %v3007_v60, %v3517_v19 }
 0x9d2   :  { %v3009_v62 = vpop.eup %3008 }
 0x9d3   :  { %v2367_v63 = vadd.f32 -1.0, %v1124_v61  ;;  %v1014_v0 = vmul.f32 2.0, %v3009_v62  ;;  %v1016_v14 = vmul.f32 %v3009_v62, %v3521_v22 }
 0x9d5   :  { %v1128_v1 = vrot.slane %v2367_v63, 1  ;;  %v2364_v2 = vadd.f32 -1.0, %v1014_v0 }
 0x9d7   :  { %1129 = vrot.lane.b32.xlu1 %v1128_v1, %s3181_s21  ;;  %v1018_v4 = vrot.slane %v2364_v2, 1 }
 0x9d9   :  { %1019 = vrot.lane.b32.xlu0 %v1018_v4, %s3181_s21 }
 0xa49   :  { %v1130_v5 = vpop.permute.xlu1 %1129 }
 0xa4a   :  { %v1132_v6 = vmul.f32 %v3007_v60, %v1130_v5 }
 0xa4b   :  { %v1020_v7 = vpop.permute.xlu0 %1019 }
 0xa4c   :  { %v1022_v8 = vmul.f32 %v3009_v62, %v1020_v7  ;;  %1134 = vrot.lane.b32.xlu1 %v1132_v6, %s3182_s11 }
 0xa4e   :  { %1024 = vrot.lane.b32.xlu0 %v1022_v8, %s3182_s11 }
 0xabe   :  { %v1135_v12 = vpop.permute.xlu1 %1134 }
 0xabf   :  { %v3559_v13 = vadd.f32 %v1135_v12, %v1126_v9 }
 0xac0   :  { %v1025_v15 = vpop.permute.xlu0 %1024 }
 0xac1   :  { %3010 = vtanh.f32 %v3559_v13  ;;  %v3563_v16 = vadd.f32 %v1025_v15, %v1016_v14 }
 0xac3   :  { %3012 = vtanh.f32 %v3563_v16 }
 0xacb   :  { %v3011_v17 = vpop.eup %3010 }
 0xacc   :  { %1140 = vrot.lane.b32.xlu1 %v3011_v17, %s3181_s21 }
 0xacd   :  { %v3013_v18 = vpop.eup %3012 }
 0xace   :  { %1030 = vrot.lane.b32.xlu0 %v3013_v18, %s3181_s21 }
 0xb3e   :  { %v1141_v20 = vpop.permute.xlu1 %1140 }
 0xb3f   :  { %v1143_v19 = vmul.f32 %v3007_v60, %v1141_v20 }
 0xb40   :  { %v1031_v23 = vpop.permute.xlu0 %1030 }
 0xb41   :  { %v1033_v24 = vmul.f32 %v3009_v62, %v1031_v23  ;;  %1145 = vrot.lane.b32.xlu1 %v1143_v19, %s3182_s11 }
 0xb43   :  { %v2170_v22 = vrot.slane %v1033_v24, 6  ;;  %1149 = vrot.lane.b32.xlu0 %v1033_v24, %s3181_s21 }
 0xb45   :  { %v3574_v26 = vsel %vm168_vm2, %v2182_v25, %v2170_v22 }
 0xbb3   :  { %v1146_v27 = vpop.permute.xlu1 %1145 }
 0xbb4   :  { %2675 = vmatmul.mubr.msk.f32.vlgmr.msra.gmra.mrb[8].mxu1 %vm208_vm8, %v1146_v27 }
 0xbb5   :  { %v1150_v30 = vpop.permute.xlu0 %1149  ;;  %2889 = vmatpush3.bf16.msra.mxu1 %v3417_v33  ;;  %2693 = vmatprep.mubr.msk.f32.mxu1 %vm3179_vm0, %v3180_v11 }
 0xbb6   :  { %v1152_v28 = vsel %vm208_vm8, %v1146_v27, %v1150_v30  ;;  %2890 = vmatprep.subr.bf16.mxu1 %v3178_v3 }
 0xbb7   :  { %2664 = vmatmul.mubr.msk.f32.vlgmr.msra.gmra.mrb[10].mxu0 %vm482_vm9, %v1152_v28 }
 0xbb8   :  { %2901 = vmatpush3.bf16.msra.mxu0 %v3353_v40  ;;  %2704 = vmatprep.mubr.msk.f32.mxu0 %vm3179_vm0, %v3180_v11 }
 0xbb9   :  { %2892 = vmatpush3.bf16.msra.mxu1 %v3420_v35  ;;  %2902 = vmatprep.subr.bf16.mxu0 %v3178_v3 }
 0xbba   :  { %2893 = vmatprep.subr.bf16.mxu1 %v3178_v3 }
 0xbbc   :  { %2904 = vmatpush3.bf16.msra.mxu0 %v3366_v47 }
 0xbbd   :  { %2895 = vmatpush3.bf16.msra.mxu1 %v3424_v38  ;;  %2905 = vmatprep.subr.bf16.mxu0 %v3178_v3 }
 0xbbe   :  { %2896 = vmatprep.subr.bf16.mxu1 %v3178_v3 }
 0xbc1   :  { %2898 = vmatpush3.bf16.msra.mxu1 %v3429_v43 }
 0xbc2   :  { %2917 = vmatprep.subr.bf16.mxu1 %v3178_v3 }
 0xc87   :  { %v1325_v37 = vpop.f32.mrb[8].mxu1 }
 0xc88   :  { %v1330_v31 = vrot.slane %v1325_v37, 4  ;;  %v2676_v32 = vpop.f32.mrb[9].mxu1 }
 0xc8a   :  { %v1332_v34 = vadd.f32 %v1330_v31, %v3404_v10  ;;  %v1222_v29 = vpop.f32.mrb[10].mxu0 }
 0xc8b   :  { %v1223_v36 = vadd.f32 %v1222_v29, %v3461_v51  ;;  %v2665_v39 = vpop.f32.mrb[11].mxu0 }
 0xc8c   :  { %v1333_v41 = vmul.f32 2.0, %v1332_v34  ;;  %v1335_v44 = vrot.slane %v1332_v34, 4 }
 0xc8d   :  { %v1226_v42 = vmul.f32 2.0, %v1223_v36 }
 0xc8e   :  { %v1338_v45 = vrot.slane %v1333_v41, 3 }
 0xc8f   :  { %v1228_v46 = vrot.slane %v1226_v42, 7 }
 0xc90   :  { %v1340_v48 = vsel %vm166_vm1, %v1335_v44, %v1338_v45 }
 0xc91   :  { %v2372_v49 = vmul.f32 -1.442695, %v1340_v48  ;;  %v1230_v50 = vsel %vm166_vm1, %v1223_v36, %v1228_v46 }
 0xc92   :  { %v2369_v52 = vmul.f32 -1.442695, %v1230_v50 }
 0xc93   :  { %3014 = vpow2.f32 %v2372_v49 }
 0xc94   :  { %3016 = vpow2.f32 %v2369_v52 }
 0xc9d   :  { %v3015_v53 = vpop.eup %3014 }
 0xc9e   :  { %v3017_v54 = vpop.eup %3016  ;;  %v1344_v55 = vadd.f32 1.0, %v3015_v53 }
 0xc9f   :  { %v1234_v56 = vadd.f32 1.0, %v3017_v54 }
 0xca0   :  { %3018 = vrcp.f32 %v1344_v55 }
 0xca1   :  { %3020 = vrcp.f32 %v1234_v56 }
 0xcaa   :  { %v3019_v57 = vpop.eup %3018 }
 0xcab   :  { %v3021_v58 = vpop.eup %3020  ;;  %v1347_v59 = vmul.f32 2.0, %v3019_v57  ;;  %v1349_v6 = vmul.f32 %v3019_v57, %v3559_v13 }
 0xcac   :  { %v1237_v60 = vmul.f32 2.0, %v3021_v58  ;;  %v1239_v8 = vmul.f32 %v3021_v58, %v3563_v16 }
 0xcad   :  { %v2373_v61 = vadd.f32 -1.0, %v1347_v59 }
 0xcae   :  { %v2370_v62 = vadd.f32 -1.0, %v1237_v60 }
 0xcaf   :  { %v1351_v63 = vrot.slane %v2373_v61, 1 }
 0xcb0   :  { %v1241_v0 = vrot.slane %v2370_v62, 1 }
 0xcb1   :  { %1352 = vrot.lane.b32.xlu1 %v1351_v63, %s3181_s21 }
 0xcb2   :  { %1242 = vrot.lane.b32.xlu0 %v1241_v0, %s3181_s21 }
 0xd23   :  { %v1353_v1 = vpop.permute.xlu1 %1352 }
 0xd24   :  { %v1355_v2 = vmul.f32 %v3019_v57, %v1353_v1  ;;  %v1243_v4 = vpop.permute.xlu0 %1242 }
 0xd25   :  { %v1245_v5 = vmul.f32 %v3021_v58, %v1243_v4 }
 0xd26   :  { %1357 = vrot.lane.b32.xlu1 %v1355_v2, %s3182_s11 }
 0xd27   :  { %1247 = vrot.lane.b32.xlu0 %v1245_v5, %s3182_s11 }
 0xd98   :  { %v1358_v7 = vpop.permute.xlu1 %1357 }
 0xd99   :  { %v3605_v9 = vadd.f32 %v1358_v7, %v1349_v6  ;;  %v1248_v12 = vpop.permute.xlu0 %1247 }
 0xd9a   :  { %v3607_v14 = vadd.f32 %v1248_v12, %v1239_v8 }
 0xd9b   :  { %3022 = vtanh.f32 %v3605_v9 }
 0xd9c   :  { %3024 = vtanh.f32 %v3607_v14 }
 0xda5   :  { %v3023_v15 = vpop.eup %3022 }
 0xda6   :  { %v3025_v17 = vpop.eup %3024  ;;  %1363 = vrot.lane.b32.xlu1 %v3023_v15, %s3181_s21 }
 0xda7   :  { %1253 = vrot.lane.b32.xlu0 %v3025_v17, %s3181_s21 }
 0xe18   :  { %v1364_v18 = vpop.permute.xlu1 %1363 }
 0xe19   :  { %v1366_v13 = vmul.f32 %v3019_v57, %v1364_v18  ;;  %v1254_v20 = vpop.permute.xlu0 %1253 }
 0xe1a   :  { %v1256_v19 = vmul.f32 %v3021_v58, %v1254_v20 }
 0xe1b   :  { %1368 = vrot.lane.b32.xlu1 %v1366_v13, %s3182_s11 }
 0xe1c   :  { %v2172_v16 = vrot.slane %v1256_v19, 5  ;;  %1372 = vrot.lane.b32.xlu0 %v1256_v19, %s3181_s21 }
 0xe1e   :  { %v3617_v21 = vsel %vm170_vm3, %v3574_v26, %v2172_v16 }
 0xe8d   :  { %v1369_v23 = vpop.permute.xlu1 %1368 }
 0xe8e   :  { %v1373_v24 = vpop.permute.xlu0 %1372  ;;  %2705 = vmatmul.mubr.msk.f32.vlgmr.msra.gmra.mrb[12].mxu0 %vm208_vm8, %v1369_v23 }
 0xe8f   :  { %v1375_v22 = vsel %vm208_vm8, %v1369_v23, %v1373_v24  ;;  %2907 = vmatpush3.bf16.msra.mxu0 %v3417_v33  ;;  %2723 = vmatprep.mubr.msk.f32.mxu0 %vm3179_vm0, %v3180_v11 }
 0xe90   :  { %2694 = vmatmul.mubr.msk.f32.vlgmr.msra.gmra.mrb[10].mxu1 %vm482_vm9, %v1375_v22  ;;  %2908 = vmatprep.subr.bf16.mxu0 %v3178_v3 }
 0xe91   :  { %2919 = vmatpush3.bf16.msra.mxu1 %v3353_v40  ;;  %2734 = vmatprep.mubr.msk.f32.mxu1 %vm3179_vm0, %v3180_v11 }
 0xe92   :  { %2920 = vmatprep.subr.bf16.mxu1 %v3178_v3 }
 0xe93   :  { %2910 = vmatpush3.bf16.msra.mxu0 %v3420_v35 }
 0xe94   :  { %2911 = vmatprep.subr.bf16.mxu0 %v3178_v3 }
 0xe95   :  { %2922 = vmatpush3.bf16.msra.mxu1 %v3366_v47 }
 0xe96   :  { %2923 = vmatprep.subr.bf16.mxu1 %v3178_v3 }
 0xe97   :  { %2913 = vmatpush3.bf16.msra.mxu0 %v3424_v38 }
 0xe98   :  { %2914 = vmatprep.subr.bf16.mxu0 %v3178_v3 }
 0xe9b   :  { %2916 = vmatpush3.bf16.msra.mxu0 %v3429_v43 }
 0xe9c   :  { %2935 = vmatprep.subr.bf16.mxu0 %v3178_v3 }
 0xf61   :  { %v1548_v25 = vpop.f32.mrb[12].mxu0 }
 0xf62   :  { %v1553_v26 = vrot.slane %v1548_v25, 3  ;;  %v2706_v27 = vpop.f32.mrb[13].mxu0 }
 0xf63   :  { %v1445_v30 = vpop.f32.mrb[10].mxu1 }
 0xf64   :  { %v1555_v28 = vadd.f32 %v1553_v26, %v3404_v10  ;;  %v1446_v37 = vadd.f32 %v1445_v30, %v3461_v51  ;;  %v2695_v31 = vpop.f32.mrb[11].mxu1 }
 0xf66   :  { %v1556_v32 = vmul.f32 2.0, %v1555_v28  ;;  %v1449_v34 = vmul.f32 2.0, %v1446_v37  ;;  %v1558_v29 = vrot.slane %v1555_v28, 5 }
 0xf68   :  { %v1561_v36 = vrot.slane %v1556_v32, 4  ;;  %v1451_v39 = vrot.slane %v1449_v34, 7 }
 0xf6a   :  { %v1563_v41 = vsel %vm166_vm1, %v1558_v29, %v1561_v36  ;;  %v1453_v42 = vsel %vm166_vm1, %v1446_v37, %v1451_v39 }
 0xf6b   :  { %v2378_v44 = vmul.f32 -1.442695, %v1563_v41  ;;  %v2375_v45 = vmul.f32 -1.442695, %v1453_v42 }
 0xf6d   :  { %3026 = vpow2.f32 %v2378_v44 }
 0xf6e   :  { %3028 = vpow2.f32 %v2375_v45 }
 0xf77   :  { %v3027_v46 = vpop.eup %3026 }
 0xf78   :  { %v3029_v48 = vpop.eup %3028  ;;  %v1567_v49 = vadd.f32 1.0, %v3027_v46 }
 0xf79   :  { %v1457_v50 = vadd.f32 1.0, %v3029_v48 }
 0xf7a   :  { %3030 = vrcp.f32 %v1567_v49 }
 0xf7b   :  { %3032 = vrcp.f32 %v1457_v50 }
 0xf84   :  { %v3031_v52 = vpop.eup %3030 }
 0xf85   :  { %v3033_v53 = vpop.eup %3032  ;;  %v1570_v54 = vmul.f32 2.0, %v3031_v52  ;;  %v1572_v0 = vmul.f32 %v3031_v52, %v3605_v9 }
 0xf86   :  { %v1460_v55 = vmul.f32 2.0, %v3033_v53  ;;  %v1462_v2 = vmul.f32 %v3033_v53, %v3607_v14 }
 0xf87   :  { %v2379_v56 = vadd.f32 -1.0, %v1570_v54 }
 0xf88   :  { %v2376_v57 = vadd.f32 -1.0, %v1460_v55 }
 0xf89   :  { %v1574_v58 = vrot.slane %v2379_v56, 1 }
 0xf8a   :  { %v1464_v59 = vrot.slane %v2376_v57, 1 }
 0xf8b   :  { %1575 = vrot.lane.b32.xlu1 %v1574_v58, %s3181_s21 }
 0xf8c   :  { %1465 = vrot.lane.b32.xlu0 %v1464_v59, %s3181_s21 }
 0xffd   :  { %v1576_v60 = vpop.permute.xlu1 %1575 }
 0xffe   :  { %v1578_v61 = vmul.f32 %v3031_v52, %v1576_v60  ;;  %v1466_v62 = vpop.permute.xlu0 %1465 }
 0xfff   :  { %v1468_v63 = vmul.f32 %v3033_v53, %v1466_v62 }
0x1000   :  { %1580 = vrot.lane.b32.xlu1 %v1578_v61, %s3182_s11 }
0x1001   :  { %1470 = vrot.lane.b32.xlu0 %v1468_v63, %s3182_s11 }
0x1072   :  { %v1581_v1 = vpop.permute.xlu1 %1580 }
0x1073   :  { %v3648_v4 = vadd.f32 %v1581_v1, %v1572_v0  ;;  %v1471_v5 = vpop.permute.xlu0 %1470 }
0x1074   :  { %v3650_v6 = vadd.f32 %v1471_v5, %v1462_v2 }
0x1075   :  { %3034 = vtanh.f32 %v3648_v4 }
0x1076   :  { %3036 = vtanh.f32 %v3650_v6 }
0x107f   :  { %v3035_v7 = vpop.eup %3034 }
0x1080   :  { %v3037_v8 = vpop.eup %3036  ;;  %1586 = vrot.lane.b32.xlu1 %v3035_v7, %s3181_s21 }
0x1081   :  { %1476 = vrot.lane.b32.xlu0 %v3037_v8, %s3181_s21 }
0x10f2   :  { %v1587_v12 = vpop.permute.xlu1 %1586 }
0x10f3   :  { %v1589_v9 = vmul.f32 %v3031_v52, %v1587_v12  ;;  %v1477_v15 = vpop.permute.xlu0 %1476 }
0x10f4   :  { %v1479_v17 = vmul.f32 %v3033_v53, %v1477_v15 }
0x10f5   :  { %1591 = vrot.lane.b32.xlu1 %v1589_v9, %s3182_s11 }
0x10f6   :  { %v2174_v14 = vrot.slane %v1479_v17, 4  ;;  %1595 = vrot.lane.b32.xlu0 %v1479_v17, %s3181_s21 }
0x10f8   :  { %v3660_v18 = vsel %vm172_vm4, %v3617_v21, %v2174_v14 }
0x1167   :  { %v1592_v13 = vpop.permute.xlu1 %1591 }
0x1168   :  { %v1596_v20 = vpop.permute.xlu0 %1595  ;;  %2735 = vmatmul.mubr.msk.f32.vlgmr.msra.gmra.mrb[12].mxu1 %vm208_vm8, %v1592_v13 }
0x1169   :  { %v1598_v19 = vsel %vm208_vm8, %v1592_v13, %v1596_v20  ;;  %2925 = vmatpush3.bf16.msra.mxu1 %v3417_v33  ;;  %2753 = vmatprep.mubr.msk.f32.mxu1 %vm3179_vm0, %v3180_v11 }
0x116a   :  { %2724 = vmatmul.mubr.msk.f32.vlgmr.msra.gmra.mrb[14].mxu0 %vm482_vm9, %v1598_v19  ;;  %2926 = vmatprep.subr.bf16.mxu1 %v3178_v3 }
0x116b   :  { %2937 = vmatpush3.bf16.msra.mxu0 %v3353_v40  ;;  %2764 = vmatprep.mubr.msk.f32.mxu0 %vm3179_vm0, %v3180_v11 }
0x116c   :  { %2938 = vmatprep.subr.bf16.mxu0 %v3178_v3 }
0x116d   :  { %2928 = vmatpush3.bf16.msra.mxu1 %v3420_v35 }
0x116e   :  { %2929 = vmatprep.subr.bf16.mxu1 %v3178_v3 }
0x116f   :  { %2940 = vmatpush3.bf16.msra.mxu0 %v3366_v47 }
0x1170   :  { %2941 = vmatprep.subr.bf16.mxu0 %v3178_v3 }
0x1171   :  { %2931 = vmatpush3.bf16.msra.mxu1 %v3424_v38 }
0x1172   :  { %2932 = vmatprep.subr.bf16.mxu1 %v3178_v3 }
0x1175   :  { %2934 = vmatpush3.bf16.msra.mxu1 %v3429_v43 }
0x1176   :  { %2953 = vmatprep.subr.bf16.mxu1 %v3178_v3 }
0x123b   :  { %v1771_v40 = vpop.f32.mrb[12].mxu1 }
0x123c   :  { %v1776_v16 = vrot.slane %v1771_v40, 2  ;;  %v2736_v21 = vpop.f32.mrb[13].mxu1 }
0x123d   :  { %v1668_v23 = vpop.f32.mrb[14].mxu0 }
0x123e   :  { %v1778_v24 = vadd.f32 %v1776_v16, %v3404_v10  ;;  %v1669_v22 = vadd.f32 %v1668_v23, %v3461_v51  ;;  %v2725_v25 = vpop.f32.mrb[15].mxu0 }
0x1240   :  { %v1779_v47 = vmul.f32 2.0, %v1778_v24  ;;  %v1672_v26 = vmul.f32 2.0, %v1669_v22  ;;  %v1781_v27 = vrot.slane %v1778_v24, 6 }
0x1242   :  { %v1784_v30 = vrot.slane %v1779_v47, 5  ;;  %v1674_v28 = vrot.slane %v1672_v26, 7 }
0x1244   :  { %v1786_v37 = vsel %vm166_vm1, %v1781_v27, %v1784_v30  ;;  %v1676_v31 = vsel %vm166_vm1, %v1669_v22, %v1674_v28 }
0x1245   :  { %v2384_v32 = vmul.f32 -1.442695, %v1786_v37  ;;  %v2381_v34 = vmul.f32 -1.442695, %v1676_v31 }
0x1247   :  { %3038 = vpow2.f32 %v2384_v32 }
0x1248   :  { %3040 = vpow2.f32 %v2381_v34 }
0x1251   :  { %v3039_v29 = vpop.eup %3038 }
0x1252   :  { %v3041_v36 = vpop.eup %3040  ;;  %v1790_v39 = vadd.f32 1.0, %v3039_v29 }
0x1253   :  { %v1680_v41 = vadd.f32 1.0, %v3041_v36 }
0x1254   :  { %3042 = vrcp.f32 %v1790_v39 }
0x1255   :  { %3044 = vrcp.f32 %v1680_v41 }
0x125e   :  { %v3043_v42 = vpop.eup %3042 }
0x125f   :  { %v3045_v44 = vpop.eup %3044  ;;  %v1793_v45 = vmul.f32 2.0, %v3043_v42  ;;  %v1795_v57 = vmul.f32 %v3043_v42, %v3648_v4 }
0x1260   :  { %v1683_v46 = vmul.f32 2.0, %v3045_v44  ;;  %v1685_v58 = vmul.f32 %v3045_v44, %v3650_v6 }
0x1261   :  { %v2385_v48 = vadd.f32 -1.0, %v1793_v45 }
0x1262   :  { %v2382_v49 = vadd.f32 -1.0, %v1683_v46 }
0x1263   :  { %v1797_v50 = vrot.slane %v2385_v48, 1 }
0x1264   :  { %v1687_v52 = vrot.slane %v2382_v49, 1 }
0x1265   :  { %1798 = vrot.lane.b32.xlu1 %v1797_v50, %s3181_s21 }
0x1266   :  { %1688 = vrot.lane.b32.xlu0 %v1687_v52, %s3181_s21 }
0x12d7   :  { %v1799_v53 = vpop.permute.xlu1 %1798 }
0x12d8   :  { %v1689_v54 = vpop.permute.xlu0 %1688  ;;  %v1801_v55 = vmul.f32 %v3043_v42, %v1799_v53 }
0x12d9   :  { %v1691_v56 = vmul.f32 %v3045_v44, %v1689_v54 }
0x12da   :  { %1803 = vrot.lane.b32.xlu1 %v1801_v55, %s3182_s11 }
0x12db   :  { %1693 = vrot.lane.b32.xlu0 %v1691_v56, %s3182_s11 }
0x134c   :  { %v1804_v59 = vpop.permute.xlu1 %1803 }
0x134d   :  { %v1694_v60 = vpop.permute.xlu0 %1693  ;;  %v3691_v61 = vadd.f32 %v1804_v59, %v1795_v57 }
0x134e   :  { %v3693_v62 = vadd.f32 %v1694_v60, %v1685_v58 }
0x134f   :  { %3046 = vtanh.f32 %v3691_v61 }
0x1350   :  { %3048 = vtanh.f32 %v3693_v62 }
0x1359   :  { %v3047_v63 = vpop.eup %3046 }
0x135a   :  { %v3049_v0 = vpop.eup %3048  ;;  %1809 = vrot.lane.b32.xlu1 %v3047_v63, %s3181_s21 }
0x135b   :  { %1699 = vrot.lane.b32.xlu0 %v3049_v0, %s3181_s21 }
0x13cc   :  { %v1810_v1 = vpop.permute.xlu1 %1809 }
0x13cd   :  { %v1700_v2 = vpop.permute.xlu0 %1699  ;;  %v1812_v4 = vmul.f32 %v3043_v42, %v1810_v1 }
0x13ce   :  { %v1702_v5 = vmul.f32 %v3045_v44, %v1700_v2 }
0x13cf   :  { %1814 = vrot.lane.b32.xlu1 %v1812_v4, %s3182_s11 }
0x13d0   :  { %v2176_v6 = vrot.slane %v1702_v5, 3  ;;  %1818 = vrot.lane.b32.xlu0 %v1702_v5, %s3181_s21 }
0x13d2   :  { %v3703_v7 = vsel %vm174_vm5, %v3660_v18, %v2176_v6 }
0x1441   :  { %v1815_v8 = vpop.permute.xlu1 %1814 }
0x1442   :  { %v1819_v12 = vpop.permute.xlu0 %1818  ;;  %2765 = vmatmul.mubr.msk.f32.vlgmr.msra.gmra.mrb[16].mxu0 %vm208_vm8, %v1815_v8 }
0x1443   :  { %v1821_v9 = vsel %vm208_vm8, %v1815_v8, %v1819_v12  ;;  %2943 = vmatpush3.bf16.msra.mxu0 %v3417_v33  ;;  %2783 = vmatprep.mubr.msk.f32.mxu0 %vm3179_vm0, %v3180_v11 }
0x1444   :  { %2754 = vmatmul.mubr.msk.f32.vlgmr.msra.gmra.mrb[14].mxu1 %vm482_vm9, %v1821_v9  ;;  %2944 = vmatprep.subr.bf16.mxu0 %v3178_v3 }
0x1445   :  { %2794 = vmatprep.mubr.msk.f32.mxu1 %vm3179_vm0, %v3180_v11 }
0x1447   :  { %2946 = vmatpush3.bf16.msra.mxu0 %v3420_v35 }
0x1448   :  { %2947 = vmatprep.subr.bf16.mxu0 %v3178_v3 }
0x144b   :  { %2949 = vmatpush3.bf16.msra.mxu0 %v3424_v38 }
0x144c   :  { %2950 = vmatprep.subr.bf16.mxu0 %v3178_v3 }
0x144f   :  { %2952 = vmatpush3.bf16.msra.mxu0 %v3429_v43 }
0x1515   :  { %v1994_v33 = vpop.f32.mrb[16].mxu0 }
0x1516   :  { %v1999_v15 = vrot.slane %v1994_v33, 1  ;;  %v2766_v17 = vpop.f32.mrb[17].mxu0 }
0x1517   :  { %v1891_v14 = vpop.f32.mrb[14].mxu1 }
0x1518   :  { %v2001_v18 = vadd.f32 %v1999_v15, %v3404_v10  ;;  %v1892_v13 = vadd.f32 %v1891_v14, %v3461_v51  ;;  %v2755_v20 = vpop.f32.mrb[15].mxu1 }
0x1519   :  { %v79_v20 = vld [vmem:[%s3806_s3 + $0x48] sm:$0xff] }
0x151a   :  { %v2002_v11 = vmul.f32 2.0, %v2001_v18  ;;  %v1895_v19 = vmul.f32 2.0, %v1892_v13  ;;  %v2004_v35 = vrot.slane %v2001_v18, 7 }
0x151c   :  { %v2007_v40 = vrot.slane %v2002_v11, 6  ;;  %v1897_v16 = vrot.slane %v1895_v19, 7  ;;  %v80_v11 = vld [vmem:[%s3806_s3 + $0x50] sm:$0xff] }
0x151e   :  { %v2009_v38 = vsel %vm166_vm1, %v2004_v35, %v2007_v40  ;;  %v1899_v21 = vsel %vm166_vm1, %v1892_v13, %v1897_v16  ;;  %v78_v13 = vld [vmem:[%s3806_s3 + $0x40] sm:$0xff]  ;;  %v81_v35 = vld [vmem:[%s3806_s3 + $0x58] sm:$0xff] }
0x151f   :  { %v2390_v23 = vmul.f32 -1.442695, %v2009_v38  ;;  %v2387_v43 = vmul.f32 -1.442695, %v1899_v21  ;;  %v2954_v19 = vpack.c.bf16 %v79_v20, %v78_v13  ;;  %v2957_v40 = vpack.c.bf16 %v81_v35, %v80_v11 }
0x1521   :  { %3050 = vpow2.f32 %v2390_v23  ;;  %2955 = vmatpush3.bf16.msra.mxu1 %v2954_v19 }
0x1522   :  { %3052 = vpow2.f32 %v2387_v43  ;;  %2956 = vmatprep.subr.bf16.mxu1 %v3178_v3 }
0x1525   :  { %2958 = vmatpush3.bf16.msra.mxu1 %v2957_v40 }
0x152b   :  { %v3051_v24 = vpop.eup %3050 }
0x152c   :  { %v3053_v22 = vpop.eup %3052  ;;  %v2013_v25 = vadd.f32 1.0, %v3051_v24 }
0x152d   :  { %v1903_v10 = vadd.f32 1.0, %v3053_v22  ;;  %v2395_v22 = vld [vmem:[%s3806_s3 + $0x62] ss:$0 sm:$0xff] }
0x152e   :  { %3054 = vrcp.f32 %v2013_v25 }
0x152f   :  { %3056 = vrcp.f32 %v1903_v10 }
0x1538   :  { %v3055_v51 = vpop.eup %3054 }
0x1539   :  { %v3057_v47 = vpop.eup %3056  ;;  %v2016_v26 = vmul.f32 2.0, %v3055_v51  ;;  %v2018_v39 = vmul.f32 %v3055_v51, %v3691_v61  ;;  %v3072_v61 = vld [vmem:[%s3806_s3 + $0x61] sm:$0x1]  ;;  %s3184_s3 = smov [#allocation10]  }
0x153a   :  { %v1906_v27 = vmul.f32 2.0, %v3057_v47  ;;  %v1908_v41 = vmul.f32 %v3057_v47, %v3693_v62  ;;  %s2297_s19 = sshll.u32 %s3184_s3, 4  ;;  %s2298_s19 = int_to_ptr.vmem [resolvable:$true] %s2297_s19 }
0x153b   :  { %v2391_v30 = vadd.f32 -1.0, %v2016_v26  ;;  %s3119_s30 = scalar_lea.vmem %s2298_s19, 32  ;;  %p3124_p5 = scmp.lt.s32.totalorder %s2298_s19, %s2298_s19 }
0x153c   :  { %v2388_v28 = vadd.f32 -1.0, %v1906_v27  ;;  %p3120_p4 = scmp.ne.s32.totalorder %s2298_s19, %s3119_s30  ;;  %p3125_p6 = scmp.lt.s32.totalorder %s3119_s30, %s3119_s30 }
0x153d   :  { %v2020_v37 = vrot.slane %v2391_v30, 1 }
0x153e   :  { %v1910_v31 = vrot.slane %v2388_v28, 1  ;;  %p3126_p7 = por %p3125_p6, %p3124_p5 }
0x153f   :  { %2021 = vrot.lane.b32.xlu0 %v2020_v37, %s3181_s21 }
0x1540   :  { %1911 = vrot.lane.b32.xlu1 %v1910_v31, %s3181_s21  ;;  %p3127_p8 = pnand %p3126_p7, %p3120_p4 }
0x15b1   :  { %v2022_v32 = vpop.permute.xlu0 %2021 }
0x15b2   :  { %v1912_v34 = vpop.permute.xlu1 %1911  ;;  %v2024_v29 = vmul.f32 %v3055_v51, %v2022_v32 }
0x15b3   :  { %v1914_v36 = vmul.f32 %v3057_v47, %v1912_v34 }
0x15b4   :  { %2026 = vrot.lane.b32.xlu0 %v2024_v29, %s3182_s11 }
0x15b5   :  { %1916 = vrot.lane.b32.xlu1 %v1914_v36, %s3182_s11 }
0x1626   :  { %v2027_v42 = vpop.permute.xlu0 %2026 }
0x1627   :  { %v1917_v44 = vpop.permute.xlu1 %1916  ;;  %v3729_v45 = vadd.f32 %v2027_v42, %v2018_v39 }
0x1628   :  { %v1919_v46 = vadd.f32 %v1917_v44, %v1908_v41 }
0x1629   :  { %3058 = vtanh.f32 %v3729_v45 }
0x162a   :  { %3060 = vtanh.f32 %v1919_v46 }
0x1633   :  { %v3059_v48 = vpop.eup %3058 }
0x1634   :  { %v3061_v49 = vpop.eup %3060  ;;  %2032 = vrot.lane.b32.xlu0 %v3059_v48, %s3181_s21 }
0x1635   :  { %1922 = vrot.lane.b32.xlu1 %v3061_v49, %s3181_s21 }
0x16a6   :  { %v2033_v50 = vpop.permute.xlu0 %2032 }
0x16a7   :  { %v1923_v52 = vpop.permute.xlu1 %1922  ;;  %v3734_v53 = vmul.f32 %v3055_v51, %v2033_v50 }
0x16a8   :  { %v1925_v54 = vmul.f32 %v3057_v47, %v1923_v52 }
0x16a9   :  { %2037 = vrot.lane.b32.xlu1 %v3734_v53, %s3182_s11 }
0x16aa   :  { %v2178_v55 = vrot.slane %v1925_v54, 2  ;;  %2041 = vrot.lane.b32.xlu0 %v1925_v54, %s3181_s21 }
0x16ac   :  { %v2187_v56 = vsel %vm176_vm6, %v3703_v7, %v2178_v55 }
0x171b   :  { %v2038_v57 = vpop.permute.xlu1 %2037 }
0x171c   :  { %v2042_v58 = vpop.permute.xlu0 %2041 }
0x171d   :  { %v2044_v59 = vsel %vm208_vm8, %v2038_v57, %v2042_v58 }
0x171e   :  { %2784 = vmatmul.mubr.msk.f32.vlgmr.msra.gmra.mrb[18].mxu0 %vm482_vm9, %v2044_v59 }
0x17f1   :  { %v2114_v60 = vpop.f32.mrb[18].mxu0 }
0x17f2   :  { %v2115_v62 = vadd.f32 %v3072_v61, %v2114_v60  ;;  %v2785_v63 = vpop.f32.mrb[19].mxu0 }
0x17f4   :  { %v2118_v0 = vmul.f32 2.0, %v2115_v62 }
0x17f6   :  { %v2120_v1 = vrot.slane %v2118_v0, 7 }
0x17f8   :  { %v2122_v2 = vsel %vm166_vm1, %v2115_v62, %v2120_v1 }
0x17f9   :  { %v2393_v4 = vmul.f32 -1.442695, %v2122_v2 }
0x17fb   :  { %3062 = vpow2.f32 %v2393_v4 }
0x1805   :  { %v3063_v5 = vpop.eup %3062 }
0x1806   :  { %v2126_v6 = vadd.f32 1.0, %v3063_v5 }
0x1808   :  { %3064 = vrcp.f32 %v2126_v6 }
0x1812   :  { %v3065_v7 = vpop.eup %3064 }
0x1813   :  { %v2129_v8 = vmul.f32 2.0, %v3065_v7  ;;  %v2131_v17 = vmul.f32 %v3065_v7, %v1919_v46 }
0x1815   :  { %v2394_v12 = vadd.f32 -1.0, %v2129_v8 }
0x1817   :  { %v2133_v9 = vrot.slane %v2394_v12, 1 }
0x1819   :  { %2134 = vrot.lane.b32.xlu1 %v2133_v9, %s3181_s21 }
0x188b   :  { %v2135_v33 = vpop.permute.xlu1 %2134 }
0x188c   :  { %v2137_v15 = vmul.f32 %v3065_v7, %v2135_v33 }
0x188e   :  { %2139 = vrot.lane.b32.xlu0 %v2137_v15, %s3182_s11 }
0x1900   :  { %v2140_v14 = vpop.permute.xlu0 %2139 }
0x1901   :  { %v2142_v18 = vadd.f32 %v2140_v14, %v2131_v17 }
0x1903   :  { %3066 = vtanh.f32 %v2142_v18  ;;  %v2160_v51 = vrot.slane %v2142_v18, 7 }
0x1905   :  { %v2162_v47 = vsel %vm166_vm1, %v3729_v45, %v2160_v51 }
0x190d   :  { %v3067_v16 = vpop.eup %3066 }
0x190e   :  { %2145 = vrot.lane.b32.xlu1 %v3067_v16, %s3181_s21 }
0x1980   :  { %v2146_v38 = vpop.permute.xlu1 %2145 }
0x1981   :  { %v2148_v21 = vmul.f32 %v3065_v7, %v2146_v38 }
0x1983   :  { %v2180_v23 = vrot.slane %v2148_v21, 1  ;;  %v2150_v31 = vrot.slane %v2148_v21, 7 }
0x1985   :  { %v2188_v43 = vsel %vm178_vm7, %v2187_v56, %v2180_v23  ;;  %v2152_v32 = vsel %vm166_vm1, %v3734_v53, %v2150_v31 }
0x1986   :  { %2194 = vrot.lane.b32.xlu0 %v2188_v43, %s3182_s11 }
0x19f8   :  { %v2195_v24 = vpop.permute.xlu0 %2194 }
0x19f9   :  { %2795 = vmatmul.mubr.msk.f32.vlgmr.msra.gmra.mrb[16].mxu1 %vm208_vm8, %v2195_v24 }
0x1acc   :  { %v2264_v25 = vpop.f32.mrb[16].mxu1 }
0x1acd   :  { %v2265_v3 = vadd.f32 %v2395_v22, %v2264_v25  ;;  %v2796_v10 = vpop.f32.mrb[17].mxu1 }
0x1acf   :  { %2268 = vmax.xlane.f32.xlu1 %v2265_v3 }
0x1ae0   :  { %2164 = vrot.lane.b32.xlu1 %v2162_v47, %s3183_s18 }
0x1b5c   :  { %v2269_v26 = vpop.xlane.xlu1 %2268 }
0x1b5d   :  { %v2270_v27 = vsub.f32 %v2265_v3, %v2269_v26 }
0x1b5f   :  { %v2271_v30 = vmul.f32 1.442695, %v2270_v27 }
0x1b60   :  { %v2165_v28 = vpop.permute.xlu1 %2164 }
0x1b61   :  { %3068 = vpow2.f32 %v2271_v30  ;;  %2167 = vst.msk [vmem:[#allocation10] sm:$0x3] %vm2157_vm10, %v2165_v28 }
0x1b6b   :  { %v3069_v37 = vpop.eup %3068 }
0x1b6c   :  { %2273 = vadd.xlane.f32.xlu0 %v3069_v37 }
0x1b82   :  { %2154 = vrot.lane.b32.xlu0 %v2152_v32, %s3182_s11 }
0x1b83   :  { %3130 = shalt.err (!%p3127_p8)
}
0x1b84   :  { %s3131_s21 = scalar_lea.hbm %s3812_s9, 32 }
0x1b85   :  { %p3132_p9 = scmp.ne.s32.totalorder %s3812_s9, %s3131_s21  ;;  %p3135_p10 = scmp.lt.u32.totalorder %s3131_s21, %s3812_s9 }
0x1b87   :  { %p3137_p11 = pnand %p3135_p10, %p3132_p9 }
0x1b89   :  { %3140 = shalt.err (!%p3137_p11)
}
0x1b8a   :  { %2300 = dma.vmem_to_hbm [thread:$0]  %s2298_s19, 32, %s3812_s9, [#allocation11]  }
0x1b8b   :  { %s3185_s15 = smov [#allocation9]  }
0x1b8c   :  { %s2287_s25 = sshll.u32 %s3185_s15, 4  ;;  %s2288_s25 = int_to_ptr.vmem [resolvable:$true] %s2287_s25 }
0x1b8d   :  { %s3141_s12 = scalar_lea.vmem %s2288_s25, 32  ;;  %p3146_p13 = scmp.lt.s32.totalorder %s2288_s25, %s2288_s25 }
0x1b8e   :  { %p3142_p12 = scmp.ne.s32.totalorder %s2288_s25, %s3141_s12  ;;  %p3147_p0 = scmp.lt.s32.totalorder %s3141_s12, %s3141_s12 }
0x1b90   :  { %p3148_p1 = por %p3147_p0, %p3146_p13 }
0x1b92   :  { %p3149_p2 = pnand %p3148_p1, %p3142_p12 }
0x1bf9   :  { %v2274_v34 = vpop.xlane.xlu0 %2273 }
0x1bfa   :  { %3070 = vlog2.f32 %v2274_v34 }
0x1bfd   :  { %v2155_v29 = vpop.permute.xlu0 %2154 }
0x1bfe   :  { %2158 = vst.msk [vmem:[#allocation9] sm:$0x3] %vm2157_vm10, %v2155_v29 }
0x1bff   :  { %3152 = shalt.err (!%p3149_p2)
}
0x1c00   :  { %s3153_s14 = scalar_lea.hbm %s3811_s8, 32 }
0x1c01   :  { %p3154_p3 = scmp.ne.s32.totalorder %s3811_s8, %s3153_s14  ;;  %p3157_p4 = scmp.lt.u32.totalorder %s3153_s14, %s3811_s8 }
0x1c03   :  { %p3159_p5 = pnand %p3157_p4, %p3154_p3 }
0x1c05   :  { %3162 = shalt.err (!%p3159_p5)
}
0x1c06   :  { %2290 = dma.vmem_to_hbm [thread:$0]  %s2288_s25, 32, %s3811_s8, [#allocation4]   ;;  %v3071_v36 = vpop.eup %3070 }
0x1c07   :  { %v2276_v39 = vmul.f32 0.6931472, %v3071_v36 }
0x1c09   :  { %v2277_v41 = vsub.f32 %v2270_v27, %v2276_v39 }
0x1c0b   :  { %2278 = vst [vmem:[%s3810_s7] sm:$0xff] %v2277_v41 }
0x1c0c   :  { %3169 = dma.done.wait [#allocation4], 32  }
0x1c0d   :  { %3170 = vsyncadd [#allocation4], 4294967264 }
0x1c0e   :  { %3171 = dma.done.wait [#allocation11], 32  }
0x1c0f   :  { %3172 = vsyncadd [#allocation11], 4294967264 }
0x1c10   :  { %2309 = vsyncpa [#allocation3], 1 }
0x1c11   :  { %2310 = vsyncpa [#allocation4], 1 }
0x1c12   :  { %2311 = vsyncpa [#allocation11], 1 }
0x1c13   :  { %2312 = vsyncpa [#allocation5], 1 }
0x1c14   :  { %2313 = vsyncpa [#allocation7], 1 }

</bundles_post_ra>
